<compile_context>
chip_gen: v5e
topology: v5e:2x2
jax: 0.10.0
libtpu: 0.0.40
codegen_flags: <defaults>
</compile_context>

<pallas_src>
import numpy as np
import jax
import jax.numpy as jnp
from jax.experimental import pallas as pl
from jax.experimental.pallas import tpu as pltpu


# ---------------------------------------------------------------------------
# Small helpers
# ---------------------------------------------------------------------------
def _round_up(x: int, m: int) -> int:
    return ((x + m - 1) // m) * m


def _vmem_limit_bytes(tile_rows, tile_k, dp_in, dp_out):
    bf16, f32 = 2, 4
    adj = 2 * 2 * tile_rows * tile_k * bf16        # 2 adjacency slabs, double-buffered
    z_k = 2 * tile_k * dp_in * bf16                # z K-block, double-buffered
    z_own = 2 * tile_rows * dp_in * bf16           # this tile's own z rows
    w = 3 * 2 * dp_in * dp_out * f32               # W_pos / W_neg / W_self (f32)
    bias = 2 * 8 * dp_out * f32
    out = 2 * tile_rows * dp_out * bf16
    acc = 2 * tile_rows * dp_in * f32              # h_pos / h_neg f32 accumulators
    total = adj + z_k + z_own + w + bias + out + acc + (4 << 20)   # headroom
    # Floor leaves room for compiler-internal scratch; the 48 MiB cap keeps
    # headroom on v7x's 64 MiB physical VMEM.  Raise to ~100 MiB on v5e/v6e.
    return int(min(max(total, 16 << 20), 48 << 20))


# ---------------------------------------------------------------------------
# Pallas kernel (shared by the first and deeper SGCN layers)
#
#   h_pos = A_pos @ z ;  h_neg = A_neg @ z     (bf16 MXU, f32 K-tiled accum)
#   out   = tanh(h_pos @ W_pos + h_neg @ W_neg + z_own @ W_self + b)
#
# The zero-block structure of W_pos/W_neg/W_self reproduces the exact SGCNConv
# balanced/unbalanced path mixing for both first_aggr=True and first_aggr=False.
# ---------------------------------------------------------------------------
def _sgcn_layer_kernel(a_pos_ref, a_neg_ref, z_k_ref, z_own_ref,
                       w_pos_ref, w_neg_ref, w_self_ref, b_ref,
                       out_ref, hpos_ref, hneg_ref):
    k = pl.program_id(1)

    @pl.when(k == 0)
    def _init():
        hpos_ref[...] = jnp.zeros_like(hpos_ref)
        hneg_ref[...] = jnp.zeros_like(hneg_ref)

    # bf16 x bf16 -> f32 accumulate: native MXU rate, no upcast copies.
    z_k = z_k_ref[...]                                            # (tile_k, Dp_in) bf16
    hpos_ref[...] += jnp.dot(a_pos_ref[...], z_k,
                             preferred_element_type=jnp.float32)
    hneg_ref[...] += jnp.dot(a_neg_ref[...], z_k,
                             preferred_element_type=jnp.float32)

    @pl.when(k == pl.num_programs(1) - 1)
    def _epilogue():
        # Three accumulating matmuls replace the concat + single matmul
        # (no (tile_rows, 3*Dp) VMEM temporary, MXU accumulates for free).
        # This epilogue is O(tile_rows * Dp^2) vs the O(tile_rows * N * Dp)
        # main loop, so keeping it f32 is cheap and avoids extra quantization.
        out = jnp.dot(hpos_ref[...], w_pos_ref[...],
                      preferred_element_type=jnp.float32)
        out = out + jnp.dot(hneg_ref[...], w_neg_ref[...],
                            preferred_element_type=jnp.float32)
        out = out + jnp.dot(z_own_ref[...].astype(jnp.float32), w_self_ref[...],
                            preferred_element_type=jnp.float32)
        out = out + b_ref[...]
        out_ref[...] = jnp.tanh(out).astype(out_ref.dtype)        # bf16 store, lane-dense


def sgcn_layer(a_pos, a_neg, z, w_pos, w_neg, w_self, bias, *, tile_rows, tile_k):
    """One SGCN layer: z (N_pad, Dp_in) bf16 -> (N_pad, Dp_out) bf16."""
    n_pad, dp_in = z.shape
    dp_out = w_pos.shape[1]
    assert n_pad % tile_rows == 0 and n_pad % tile_k == 0
    assert tile_rows % 8 == 0 and tile_k % 128 == 0 and dp_in % 128 == 0 and dp_out % 128 == 0

    grid = (n_pad // tile_rows, n_pad // tile_k)   # reduction (K) axis last

    return pl.pallas_call(
        _sgcn_layer_kernel,
        out_shape=jax.ShapeDtypeStruct((n_pad, dp_out), jnp.bfloat16),
        grid_spec=pltpu.PrefetchScalarGridSpec(
            num_scalar_prefetch=0,
            grid=grid,
            in_specs=[
                # A slabs: the only large per-step streams.  Bump to
                # pipeline_mode=pl.Buffered(3) if profiling shows exposed DMA.
                pl.BlockSpec((tile_rows, tile_k), lambda i, k: (i, k)),   # A_pos (bf16)
                pl.BlockSpec((tile_rows, tile_k), lambda i, k: (i, k)),   # A_neg (bf16)
                pl.BlockSpec((tile_k, dp_in), lambda i, k: (k, 0)),       # z K-block (bf16)
                pl.BlockSpec((tile_rows, dp_in), lambda i, k: (i, 0)),    # z own rows (bf16)
                pl.BlockSpec((dp_in, dp_out), lambda i, k: (0, 0)),       # W_pos (f32)
                pl.BlockSpec((dp_in, dp_out), lambda i, k: (0, 0)),       # W_neg (f32)
                pl.BlockSpec((dp_in, dp_out), lambda i, k: (0, 0)),       # W_self (f32)
                pl.BlockSpec((1, dp_out), lambda i, k: (0, 0)),           # bias (f32)
            ],
            out_specs=pl.BlockSpec((tile_rows, dp_out), lambda i, k: (i, 0)),
            scratch_shapes=[
                pltpu.VMEM((tile_rows, dp_in), jnp.float32),   # h_pos accumulator
                pltpu.VMEM((tile_rows, dp_in), jnp.float32),   # h_neg accumulator
            ],
        ),
        compiler_params=pltpu.CompilerParams(
            dimension_semantics=("parallel", "arbitrary"),
            vmem_limit_bytes=_vmem_limit_bytes(tile_rows, tile_k, dp_in, dp_out),
        ),
    )(a_pos, a_neg, z, z, w_pos, w_neg, w_self, bias)


def sgcn_forward_pallas(a_pos, a_neg, x_pad_bf16, packed_params, tile_rows, tile_k):
    # TODO(synk): when 2*N_pad^2 bf16 + scratch fits VMEM, fuse all layers into
    # one pallas_call with A resident across a leading "arbitrary" layer axis.
    z = x_pad_bf16
    for (w_pos, w_neg, w_self, bias) in packed_params:
        z = sgcn_layer(a_pos, a_neg, z, w_pos, w_neg, w_self, bias,
                       tile_rows=tile_rows, tile_k=tile_k)
    return z


# ---------------------------------------------------------------------------
# One-time host-side parameter packing (removes all per-call slicing/transposes).
# Each layer packs into three (Dp_in, Dp_out) blocks + a (1, Dp_out) bias.
# ---------------------------------------------------------------------------
def _pack_first_layer(Wb, bb, Wu, bu, in_dim, din_p, dp_out):
    # out_b = [A_pos@x, x] @ Wb.T + bb ; out_u = [A_neg@x, x] @ Wu.T + bu
    half = Wb.shape[0]
    Wp = np.zeros((din_p, dp_out), np.float32)
    Wn = np.zeros((din_p, dp_out), np.float32)
    Ws = np.zeros((din_p, dp_out), np.float32)
    Wp[:in_dim, :half] = Wb[:, :in_dim].T                         # h_pos -> out_b
    Wn[:in_dim, half:2 * half] = Wu[:, :in_dim].T                 # h_neg -> out_u
    Ws[:in_dim, :half] = Wb[:, in_dim:2 * in_dim].T               # x -> out_b
    Ws[:in_dim, half:2 * half] = Wu[:, in_dim:2 * in_dim].T       # x -> out_u
    bc = np.zeros((1, dp_out), np.float32)
    bc[0, :half] = bb
    bc[0, half:2 * half] = bu
    return tuple(jnp.asarray(a) for a in (Wp, Wn, Ws, bc))


def _pack_deep_layer(Wb, bb, Wu, bu, dp):
    # out_b = [A_pos@zb, A_neg@zu, zb] @ Wb.T + bb
    # out_u = [A_pos@zu, A_neg@zb, zu] @ Wu.T + bu
    half = Wb.shape[0]
    Wp = np.zeros((dp, dp), np.float32)
    Wn = np.zeros((dp, dp), np.float32)
    Ws = np.zeros((dp, dp), np.float32)
    Wp[:half, :half] = Wb[:, :half].T                             # A_pos@zb -> out_b
    Wp[half:2 * half, half:2 * half] = Wu[:, :half].T             # A_pos@zu -> out_u
    Wn[half:2 * half, :half] = Wb[:, half:2 * half].T             # A_neg@zu -> out_b
    Wn[:half, half:2 * half] = Wu[:, half:2 * half].T             # A_neg@zb -> out_u
    Ws[:half, :half] = Wb[:, 2 * half:3 * half].T                 # zb -> out_b
    Ws[half:2 * half, half:2 * half] = Wu[:, 2 * half:3 * half].T  # zu -> out_u
    bc = np.zeros((1, dp), np.float32)
    bc[0, :half] = bb
    bc[0, half:2 * half] = bu
    return tuple(jnp.asarray(a) for a in (Wp, Wn, Ws, bc))


def pack_sgcn_params(params, in_dim, din_p, dp_out):
    packed = []
    Wb, bb, Wu, bu = params[0]
    packed.append(_pack_first_layer(np.asarray(Wb), np.asarray(bb),
                                    np.asarray(Wu), np.asarray(bu),
                                    in_dim, din_p, dp_out))
    for (Wb, bb, Wu, bu) in params[1:]:
        packed.append(_pack_deep_layer(np.asarray(Wb), np.asarray(bb),
                                       np.asarray(Wu), np.asarray(bu), dp_out))
    return packed


# ---------------------------------------------------------------------------
# Graph preprocessing, spectral features, parameter init (host side)
# ---------------------------------------------------------------------------
def build_mean_adjacency_np(edge_index, n_pad):
    """A[dst, src] = 1 / in_degree(dst); zero rows/cols for isolated/padded nodes."""
    A = np.zeros((n_pad, n_pad), dtype=np.float32)
    edge_index = np.asarray(edge_index)
    if edge_index.size:
        src, dst = edge_index
        np.add.at(A, (dst, src), 1.0)
    deg = A.sum(axis=1, keepdims=True)
    return A / np.maximum(deg, 1.0)


def create_spectral_features(pos_edge_index, neg_edge_index, n, in_dim):
    # Faithful re-implementation of SGCN.create_spectral_features with a dense
    # SVD (TruncatedSVD replaced by np.linalg.svd; singular-vector sign may
    # differ — acceptable host-side preprocessing quirk, not a kernel issue).
    vals = np.zeros((n, n), dtype=np.float64)
    mask = np.zeros((n, n), dtype=bool)
    pr, pc = np.asarray(pos_edge_index)
    nr, nc = np.asarray(neg_edge_index)
    np.add.at(vals, (pr, pc), 2.0)
    np.add.at(vals, (pc, pr), 2.0)
    mask[pr, pc] = True
    mask[pc, pr] = True
    mask[nr, nc] = True
    mask[nc, nr] = True
    A = np.where(mask, vals - 1.0, 0.0)
    _, _, Vt = np.linalg.svd(A)
    x = Vt[:in_dim].T
    return np.asarray(x, dtype=np.float32)


def init_linear(key, out_features, in_features):
    kw, kb = jax.random.split(key)
    bound = 1.0 / np.sqrt(in_features)
    W = jax.random.uniform(kw, (out_features, in_features), jnp.float32, -bound, bound)
    b = jax.random.uniform(kb, (out_features,), jnp.float32, -bound, bound)
    return W, b


# ---------------------------------------------------------------------------
# Pure-JAX reference of the SGCN forward (unpacked weights, unpadded shapes).
# quantize_bf16=True mimics the kernel's dtype path (bf16 A, bf16 z at layer
# boundaries) so the comparison isolates kernel/tiling correctness.
# ---------------------------------------------------------------------------
def _q(x):
    return jnp.asarray(x).astype(jnp.bfloat16).astype(jnp.float32)


def sgcn_forward_ref(a_pos, a_neg, x, params, *, quantize_bf16):
    q = _q if quantize_bf16 else (lambda v: jnp.asarray(v))
    a_pos, a_neg = q(a_pos), q(a_neg)
    Wb, bb, Wu, bu = params[0]
    xq = q(x)
    out_b = jnp.concatenate([a_pos @ xq, xq], 1) @ Wb.T + bb
    out_u = jnp.concatenate([a_neg @ xq, xq], 1) @ Wu.T + bu
    z = jnp.tanh(jnp.concatenate([out_b, out_u], 1))
    F = Wb.shape[0]
    for (Wb, bb, Wu, bu) in params[1:]:
        zq = q(z)
        zb, zu = zq[:, :F], zq[:, F:]
        out_b = jnp.concatenate([a_pos @ zb, a_neg @ zu, zb], 1) @ Wb.T + bb
        out_u = jnp.concatenate([a_pos @ zu, a_neg @ zb, zu], 1) @ Wu.T + bu
        z = jnp.tanh(jnp.concatenate([out_b, out_u], 1))
    return z


# TODO(synk): nll_loss / pos_embedding_loss / neg_embedding_loss / discriminate
# rely on negative_sampling and are not part of forward(); not implemented.

if __name__ == "__main__":
    node_num = 200
    in_dim = 16
    out_dim = 32
    layer_num = 2
    num_edges = 600
    # Demo tiles sized so both grid axes have >1 step (exercises the K-tiled
    # accumulator and gives an even row-tile count for v7x's 2 TCs).
    # Production: tile_rows >= 256 (MXU M-dim on v6e/v7x), tile_k ~1024-2048.
    tile_rows = 128
    tile_k = 128

    key = jax.random.PRNGKey(0)
    k_src, k_dst, k_sign, k_l1, *k_rest = jax.random.split(key, 3 + layer_num)

    # Deterministic signed edge list (E, 3): [src, dst, sign in {-1, +1}]
    src = jax.random.randint(k_src, (num_edges,), 0, node_num)
    dst = jax.random.randint(k_dst, (num_edges,), 0, node_num)
    sign = jnp.where(jax.random.bernoulli(k_sign, 0.5, (num_edges,)), 1, -1)
    edge_index_s = np.stack([np.asarray(src), np.asarray(dst), np.asarray(sign)], axis=1)

    pos_edge_index = edge_index_s[edge_index_s[:, 2] > 0][:, :2].T
    neg_edge_index = edge_index_s[edge_index_s[:, 2] < 0][:, :2].T

    # Padded sizes: rows to a lane-dense multiple of 128 (and of both tiles),
    # feature dims to lane-dense 128.
    n_pad = _round_up(node_num, max(128, tile_rows, tile_k))
    assert n_pad % tile_rows == 0 and n_pad % tile_k == 0
    din_p = _round_up(in_dim, 128)
    dp = _round_up(out_dim, 128)

    # bf16 adjacencies fed straight into the MXU (f32 kept for the reference).
    a_pos_np = build_mean_adjacency_np(pos_edge_index, n_pad)
    a_neg_np = build_mean_adjacency_np(neg_edge_index, n_pad)
    a_pos_bf = jnp.asarray(a_pos_np, jnp.bfloat16)
    a_neg_bf = jnp.asarray(a_neg_np, jnp.bfloat16)

    x = create_spectral_features(pos_edge_index, neg_edge_index, node_num, in_dim)
    x_pad = np.zeros((n_pad, din_p), np.float32)
    x_pad[:node_num, :in_dim] = x
    x_pad_bf = jnp.asarray(x_pad, jnp.bfloat16)

    # Parameters: conv1 is Linear(2*in_dim, out_dim//2) x2 (pos/neg paths);
    # deeper convs are Linear(3*(out_dim//2), out_dim//2) x2.
    half = out_dim // 2
    kb1, ku1 = jax.random.split(k_l1)
    params = [(*init_linear(kb1, half, 2 * in_dim), *init_linear(ku1, half, 2 * in_dim))]
    for kl in k_rest:
        kb, ku = jax.random.split(kl)
        params.append((*init_linear(kb, half, 3 * half), *init_linear(ku, half, 3 * half)))

    # One-time weight packing (no per-call slicing/transposes).
    packed_params = pack_sgcn_params(params, in_dim, din_p, dp)

    z_pad = sgcn_forward_pallas(a_pos_bf, a_neg_bf, x_pad_bf, packed_params,
                                tile_rows, tile_k)
    z_pad = jax.block_until_ready(z_pad)
    z = np.asarray(z_pad.astype(jnp.float32))[:node_num, :out_dim]

    a_pos32 = jnp.asarray(a_pos_np[:node_num, :node_num])
    a_neg32 = jnp.asarray(a_neg_np[:node_num, :node_num])
    with jax.default_matmul_precision("highest"):
        z_ref_q = sgcn_forward_ref(a_pos32, a_neg32, x, params, quantize_bf16=True)
        z_ref_f = sgcn_forward_ref(a_pos32, a_neg32, x, params, quantize_bf16=False)

    # Tight check vs a reference that mimics the kernel's bf16 quantization
    # points (A, layer-boundary z); residual error = bf16 output-store rounding
    # plus f32 accumulation-order differences.
    np.testing.assert_allclose(z, np.asarray(z_ref_q), atol=1e-2, rtol=0)
    # Loose sanity bound vs the true f32 SGCN forward, documenting the total
    # bf16 input/activation quantization deviation (review correctness note).
    np.testing.assert_allclose(z, np.asarray(z_ref_f), atol=1e-1, rtol=0)

    assert z.shape == (node_num, out_dim)
    print("KERNEL_OK")
</pallas_src>

<mosaic_0001>
module attributes {stable_mosaic.version = 11 : i64} {
  func.func @_sgcn_layer_kernel(%arg0: i32, %arg1: i32, %arg2: memref<128x128xbf16, #tpu.memory_space<vmem>>, %arg3: memref<128x128xbf16, #tpu.memory_space<vmem>>, %arg4: memref<128x128xbf16, #tpu.memory_space<vmem>>, %arg5: memref<128x128xbf16, #tpu.memory_space<vmem>>, %arg6: memref<128x128xf32, #tpu.memory_space<vmem>>, %arg7: memref<128x128xf32, #tpu.memory_space<vmem>>, %arg8: memref<128x128xf32, #tpu.memory_space<vmem>>, %arg9: memref<1x128xf32, #tpu.memory_space<vmem>>, %arg10: memref<128x128xbf16, #tpu.memory_space<vmem>>, %arg11: memref<128x128xf32, #tpu.memory_space<vmem>>, %arg12: memref<128x128xf32, #tpu.memory_space<vmem>>) attributes {dimension_semantics = [#tpu.dimension_semantics<parallel>, #tpu.dimension_semantics<arbitrary>], iteration_bounds = array<i64: 2, 2>, scalar_prefetch = 0 : i64, scratch_operands = 2 : i64, tpu.core_type = #tpu.core_type<tc>, window_params = [{transform_indices = @transform_0, window_bounds = array<i64: 128, 128>}, {transform_indices = @transform_1, window_bounds = array<i64: 128, 128>}, {transform_indices = @transform_2, window_bounds = array<i64: 128, 128>}, {transform_indices = @transform_3, window_bounds = array<i64: 128, 128>}, {pipeline_mode = #tpu.pipeline_mode<synchronous>, transform_indices = @transform_4, window_bounds = array<i64: 128, 128>}, {pipeline_mode = #tpu.pipeline_mode<synchronous>, transform_indices = @transform_5, window_bounds = array<i64: 128, 128>}, {pipeline_mode = #tpu.pipeline_mode<synchronous>, transform_indices = @transform_6, window_bounds = array<i64: 128, 128>}, {pipeline_mode = #tpu.pipeline_mode<synchronous>, transform_indices = @transform_7, window_bounds = array<i64: 1, 128>}, {transform_indices = @transform_8, window_bounds = array<i64: 128, 128>}]} {
    %c0_i32 = arith.constant 0 : i32
    %0 = arith.cmpi eq, %arg1, %c0_i32 : i32
    %1 = arith.extui %0 : i1 to i32
    %c0_i32_0 = arith.constant 0 : i32
    %2 = arith.cmpi ne, %1, %c0_i32_0 : i32
    scf.if %2 {
      %cst_16 = arith.constant 0.000000e+00 : f32
      %17 = vector.broadcast %cst_16 : f32 to vector<128x128xf32>
      %c0_17 = arith.constant 0 : index
      %c0_18 = arith.constant 0 : index
      %18 = vector.load %arg11[%c0_17, %c0_18] : memref<128x128xf32, #tpu.memory_space<vmem>>, vector<128x128xf32>
      tpu.vector_store %arg11[%c0_17, %c0_18], %17 {strides = array<i32>} : memref<128x128xf32, #tpu.memory_space<vmem>>, vector<128x128xf32>,
      %cst_19 = arith.constant 0.000000e+00 : f32
      %19 = vector.broadcast %cst_19 : f32 to vector<128x128xf32>
      %c0_20 = arith.constant 0 : index
      %c0_21 = arith.constant 0 : index
      %20 = vector.load %arg12[%c0_20, %c0_21] : memref<128x128xf32, #tpu.memory_space<vmem>>, vector<128x128xf32>
      tpu.vector_store %arg12[%c0_20, %c0_21], %19 {strides = array<i32>} : memref<128x128xf32, #tpu.memory_space<vmem>>, vector<128x128xf32>,
    } else {
    }
    %c0 = arith.constant 0 : index
    %c0_1 = arith.constant 0 : index
    %3 = vector.load %arg4[%c0, %c0_1] : memref<128x128xbf16, #tpu.memory_space<vmem>>, vector<128x128xbf16>
    %c0_2 = arith.constant 0 : index
    %c0_3 = arith.constant 0 : index
    %4 = vector.load %arg11[%c0_2, %c0_3] : memref<128x128xf32, #tpu.memory_space<vmem>>, vector<128x128xf32>
    %c0_4 = arith.constant 0 : index
    %c0_5 = arith.constant 0 : index
    %5 = vector.load %arg2[%c0_4, %c0_5] : memref<128x128xbf16, #tpu.memory_space<vmem>>, vector<128x128xbf16>
    %cst = arith.constant dense<0.000000e+00> : vector<128x128xf32>
    %6 = tpu.matmul %5, %3, %cst {dimension_numbers = #tpu.dot_dimension_numbers<[1], [0], [0], [1], [0, 0, 1, 1], [], []>} : vector<128x128xbf16>, vector<128x128xbf16>, vector<128x128xf32> -> vector<128x128xf32>
    %7 = arith.addf %4, %6 : vector<128x128xf32>
    %c0_6 = arith.constant 0 : index
    %c0_7 = arith.constant 0 : index
    %8 = vector.load %arg11[%c0_6, %c0_7] : memref<128x128xf32, #tpu.memory_space<vmem>>, vector<128x128xf32>
    tpu.vector_store %arg11[%c0_6, %c0_7], %7 {strides = array<i32>} : memref<128x128xf32, #tpu.memory_space<vmem>>, vector<128x128xf32>,
    %c0_8 = arith.constant 0 : index
    %c0_9 = arith.constant 0 : index
    %9 = vector.load %arg12[%c0_8, %c0_9] : memref<128x128xf32, #tpu.memory_space<vmem>>, vector<128x128xf32>
    %c0_10 = arith.constant 0 : index
    %c0_11 = arith.constant 0 : index
    %10 = vector.load %arg3[%c0_10, %c0_11] : memref<128x128xbf16, #tpu.memory_space<vmem>>, vector<128x128xbf16>
    %cst_12 = arith.constant dense<0.000000e+00> : vector<128x128xf32>
    %11 = tpu.matmul %10, %3, %cst_12 {dimension_numbers = #tpu.dot_dimension_numbers<[1], [0], [0], [1], [0, 0, 1, 1], [], []>} : vector<128x128xbf16>, vector<128x128xbf16>, vector<128x128xf32> -> vector<128x128xf32>
    %12 = arith.addf %9, %11 : vector<128x128xf32>
    %c0_13 = arith.constant 0 : index
    %c0_14 = arith.constant 0 : index
    %13 = vector.load %arg12[%c0_13, %c0_14] : memref<128x128xf32, #tpu.memory_space<vmem>>, vector<128x128xf32>
    tpu.vector_store %arg12[%c0_13, %c0_14], %12 {strides = array<i32>} : memref<128x128xf32, #tpu.memory_space<vmem>>, vector<128x128xf32>,
    %c1_i32 = arith.constant 1 : i32
    %14 = arith.cmpi eq, %arg1, %c1_i32 : i32
    %15 = arith.extui %14 : i1 to i32
    %c0_i32_15 = arith.constant 0 : i32
    %16 = arith.cmpi ne, %15, %c0_i32_15 : i32
    scf.if %16 {
      %c0_16 = arith.constant 0 : index
      %c0_17 = arith.constant 0 : index
      %17 = vector.load %arg11[%c0_16, %c0_17] : memref<128x128xf32, #tpu.memory_space<vmem>>, vector<128x128xf32>
      %c0_18 = arith.constant 0 : index
      %c0_19 = arith.constant 0 : index
      %18 = vector.load %arg6[%c0_18, %c0_19] : memref<128x128xf32, #tpu.memory_space<vmem>>, vector<128x128xf32>
      %cst_20 = arith.constant dense<0.000000e+00> : vector<128x128xf32>
      %19 = tpu.matmul %17, %18, %cst_20 {dimension_numbers = #tpu.dot_dimension_numbers<[1], [0], [0], [1], [0, 0, 1, 1], [], []>} : vector<128x128xf32>, vector<128x128xf32>, vector<128x128xf32> -> vector<128x128xf32>
      %c0_21 = arith.constant 0 : index
      %c0_22 = arith.constant 0 : index
      %20 = vector.load %arg12[%c0_21, %c0_22] : memref<128x128xf32, #tpu.memory_space<vmem>>, vector<128x128xf32>
      %c0_23 = arith.constant 0 : index
      %c0_24 = arith.constant 0 : index
      %21 = vector.load %arg7[%c0_23, %c0_24] : memref<128x128xf32, #tpu.memory_space<vmem>>, vector<128x128xf32>
      %cst_25 = arith.constant dense<0.000000e+00> : vector<128x128xf32>
      %22 = tpu.matmul %20, %21, %cst_25 {dimension_numbers = #tpu.dot_dimension_numbers<[1], [0], [0], [1], [0, 0, 1, 1], [], []>} : vector<128x128xf32>, vector<128x128xf32>, vector<128x128xf32> -> vector<128x128xf32>
      %23 = arith.addf %19, %22 : vector<128x128xf32>
      %c0_26 = arith.constant 0 : index
      %c0_27 = arith.constant 0 : index
      %24 = vector.load %arg5[%c0_26, %c0_27] : memref<128x128xbf16, #tpu.memory_space<vmem>>, vector<128x128xbf16>
      %25 = arith.extf %24 : vector<128x128xbf16> to vector<128x128xf32>
      %c0_28 = arith.constant 0 : index
      %c0_29 = arith.constant 0 : index
      %26 = vector.load %arg8[%c0_28, %c0_29] : memref<128x128xf32, #tpu.memory_space<vmem>>, vector<128x128xf32>
      %cst_30 = arith.constant dense<0.000000e+00> : vector<128x128xf32>
      %27 = tpu.matmul %25, %26, %cst_30 {dimension_numbers = #tpu.dot_dimension_numbers<[1], [0], [0], [1], [0, 0, 1, 1], [], []>} : vector<128x128xf32>, vector<128x128xf32>, vector<128x128xf32> -> vector<128x128xf32>
      %28 = arith.addf %23, %27 : vector<128x128xf32>
      %c0_31 = arith.constant 0 : index
      %c0_32 = arith.constant 0 : index
      %29 = vector.load %arg9[%c0_31, %c0_32] : memref<1x128xf32, #tpu.memory_space<vmem>>, vector<1x128xf32>
      %30 = vector.broadcast %29 : vector<1x128xf32> to vector<128x128xf32>
      %31 = arith.addf %28, %30 : vector<128x128xf32>
      %32 = math.tanh %31 : vector<128x128xf32>
      %33 = arith.truncf %32 : vector<128x128xf32> to vector<128x128xbf16>
      %c0_33 = arith.constant 0 : index
      %c0_34 = arith.constant 0 : index
      %34 = vector.load %arg10[%c0_33, %c0_34] : memref<128x128xbf16, #tpu.memory_space<vmem>>, vector<128x128xbf16>
      tpu.vector_store %arg10[%c0_33, %c0_34], %33 {strides = array<i32>} : memref<128x128xbf16, #tpu.memory_space<vmem>>, vector<128x128xbf16>,
    } else {
    }
    return
  }
  func.func @transform_0(%arg0: i32, %arg1: i32) -> (i32, i32) {
    %c0_i32 = arith.constant 0 : i32
    return %arg0, %arg1 : i32, i32
  }
  func.func @transform_1(%arg0: i32, %arg1: i32) -> (i32, i32) {
    %c0_i32 = arith.constant 0 : i32
    return %arg0, %arg1 : i32, i32
  }
  func.func @transform_2(%arg0: i32, %arg1: i32) -> (i32, i32) {
    %c0_i32 = arith.constant 0 : i32
    %c0_i32_0 = arith.constant 0 : i32
    return %arg1, %c0_i32 : i32, i32
  }
  func.func @transform_3(%arg0: i32, %arg1: i32) -> (i32, i32) {
    %c0_i32 = arith.constant 0 : i32
    %c0_i32_0 = arith.constant 0 : i32
    return %arg0, %c0_i32 : i32, i32
  }
  func.func @transform_4(%arg0: i32, %arg1: i32) -> (i32, i32) {
    %c0_i32 = arith.constant 0 : i32
    %c0_i32_0 = arith.constant 0 : i32
    %c0_i32_1 = arith.constant 0 : i32
    return %c0_i32, %c0_i32_0 : i32, i32
  }
  func.func @transform_5(%arg0: i32, %arg1: i32) -> (i32, i32) {
    %c0_i32 = arith.constant 0 : i32
    %c0_i32_0 = arith.constant 0 : i32
    %c0_i32_1 = arith.constant 0 : i32
    return %c0_i32, %c0_i32_0 : i32, i32
  }
  func.func @transform_6(%arg0: i32, %arg1: i32) -> (i32, i32) {
    %c0_i32 = arith.constant 0 : i32
    %c0_i32_0 = arith.constant 0 : i32
    %c0_i32_1 = arith.constant 0 : i32
    return %c0_i32, %c0_i32_0 : i32, i32
  }
  func.func @transform_7(%arg0: i32, %arg1: i32) -> (i32, i32) {
    %c0_i32 = arith.constant 0 : i32
    %c0_i32_0 = arith.constant 0 : i32
    %c0_i32_1 = arith.constant 0 : i32
    return %c0_i32, %c0_i32_0 : i32, i32
  }
  func.func @transform_8(%arg0: i32, %arg1: i32) -> (i32, i32) {
    %c0_i32 = arith.constant 0 : i32
    %c0_i32_0 = arith.constant 0 : i32
    return %arg0, %c0_i32 : i32, i32
  }
}

</mosaic_0001>

<bundles_post_ra>
// kernel: tpu_custom_call.1
= control target key start
LH: loop header
LB: loop body
LE: loop exit
PB: predicated region body
PF: predicated region fallthrough
CT: control target
= control target key end

     0   :  { %s3056_s0 = inlined_call_operand.hbm [shape: bf16[256,256], index: 0, kind: input, shape index: {}]   ;;  %s3057_s1 = inlined_call_operand.hbm [shape: bf16[256,256], index: 1, kind: input, shape index: {}]   ;;  %s3058_s2 = inlined_call_operand.hbm [shape: bf16[256,128], index: 2, kind: input, shape index: {}]   ;;  %s3059_s3 = inlined_call_operand.hbm [shape: bf16[256,128], index: 3, kind: input, shape index: {}]   ;;  %s3060_s4 = inlined_call_operand.hbm [shape: f32[128,128], index: 4, kind: input, shape index: {}]   ;;  %s3061_s5 = inlined_call_operand.hbm [shape: f32[128,128], index: 5, kind: input, shape index: {}]   ;;  %s3062_s6 = inlined_call_operand.hbm [shape: f32[128,128], index: 6, kind: input, shape index: {}]   ;;  %s3063_s7 = inlined_call_operand.vmem [shape: f32[1,128], index: 7, kind: input, shape index: {}]   ;;  %s3064_s8 = inlined_call_operand.hbm [shape: bf16[256,128], index: 8, kind: output, shape index: {}]  }
   0x1   :  { %3084 = sst [smem:[#allocation34_spill]] %s3056_s0 }
   0x2   :  { %3085 = sst [smem:[#allocation35_spill]] %s3057_s1 }
   0x3   :  { %3086 = sst [smem:[#allocation36_spill]] %s3058_s2 }
   0x4   :  { %3087 = sst [smem:[#allocation37_spill]] %s3059_s3 }
   0x5   :  { %3088 = sst [smem:[#allocation38_spill]] %s3060_s4 }
   0x6   :  { %3089 = sst [smem:[#allocation39_spill]] %s3061_s5 }
   0x7   :  { %3090 = sst [smem:[#allocation40_spill]] %s3062_s6 }
   0x8   :  { %3091 = sst [smem:[#allocation41_spill]] %s3063_s7 }
   0x9   :  { %3092 = sst [smem:[#allocation42_spill]] %s3064_s8 }
   0xa   :  { %13 = vsyncpa [#allocation5], 0 }
   0xb   :  { %15 = vsyncpa [#allocation5 + $0x1], 0 }
   0xc   :  { %16 = vsyncpa [#allocation8], 0 }
   0xd   :  { %18 = vsyncpa [#allocation8 + $0x1], 0 }
   0xe   :  { %19 = vsyncpa [#allocation11], 0 }
   0xf   :  { %21 = vsyncpa [#allocation11 + $0x1], 0 }
  0x10   :  { %22 = vsyncpa [#allocation14], 0 }
  0x11   :  { %23 = vsyncpa [#allocation6], 0 }
  0x12   :  { %25 = vsyncpa [#allocation6 + $0x1], 0  ;;  %s2495_s27 = smov 0   ;;  %s2497_s28 = smov 0  }
  0x13   :  { %s2499_s29 = smov 0   ;;  %s2501_s30 = smov 0  }
  0x14   :  { %s2503_s9 = smov 0   ;;  %s2505_s10 = smov 0  }
  0x15   :  { %s2507_s11 = smov 0   ;;  %s2509_s12 = smov 0  }
  0x16   :  { %s2511_s13 = smov 0   ;;  %s2513_s14 = smov 0  }
  0x17   :  { %s2515_s15 = smov 0   ;;  %s2517_s16 = smov 0  }
  0x18   :  { %s2519_s17 = smov 0   ;;  %s2521_s18 = smov 0  }
  0x19 LB: > { %3093 = sst [smem:[#allocation24_spill]] %s2386_s27  ;;  %s2566_s19 = sadd.s32 4294967295, %s2438_s18   ;;  %s2438_s18 = sphi %s2521_s18, %s31_s18   ;;  %s2434_s17 = sphi %s2519_s17, %s3141_s17   ;;  %s2430_s16 = sphi %s2517_s16, %s3152_s16   ;;  %s2426_s15 = sphi %s2515_s15, %s3139_s15   ;;  %s2422_s14 = sphi %s2513_s14, %s3151_s14   ;;  %s2418_s13 = sphi %s2511_s13, %s3150_s13   ;;  %s2414_s12 = sphi %s2509_s12, %s3149_s12   ;;  %s2410_s11 = sphi %s2507_s11, %s3138_s11   ;;  %s2406_s10 = sphi %s2505_s10, %s3148_s10   ;;  %s2402_s9 = sphi %s2503_s9, %s3147_s9   ;;  %s2398_s30 = sphi %s2501_s30, %s3146_s30   ;;  %s2394_s29 = sphi %s2499_s29, %s3145_s29   ;;  %s2390_s28 = sphi %s2497_s28, %s3144_s28   ;;  %s2386_s27 = sphi %s2495_s27, %s3143_s27  }
  0x1a   : > { %3094 = sst [smem:[#allocation25_spill]] %s2414_s12  ;;  %p1540_p0 = scmp.ge.s32.totalorder %s2438_s18, 1 }
  0x1b   : > { %3095 = sst [smem:[#allocation26_spill]] %s2422_s14  ;;  %p66_p1 = scmp.eq.s32.totalorder %s2566_s19, 0 }
  0x1c   : > { %3096 = sst [smem:[#allocation27_spill]] %s2426_s15  ;;  %p253_p2 = scmp.eq.s32.totalorder %s2566_s19, 3 }
  0x1d   : > { %3097 = sst [smem:[#allocation28_spill]] %s2434_s17  ;;  %p266_p3 = scmp.lt.s32.totalorder %s2438_s18, 5 }
  0x1e   : > { %s3098_s4 = sld [smem:[#allocation38_spill]]  ;;  %s2440_s24 = smov [#allocation12]  }
  0x1f   : > { %p2575_p4 = pnand %p1540_p0, %p266_p3  ;;  %s279_s25 = sshll.u32 %s2440_s24, 4  ;;  %s280_s25 = int_to_ptr.vmem [resolvable:$true] %s279_s25 }
  0x20   : > { %s3102_s5 = sld [smem:[#allocation39_spill]]  ;;  %s2441_s24 = smov [#allocation13]  }
  0x21   : > { %s3099_s23 = scalar_select %p2575_p4, 1, 0 }
  0x22   : > { %p1872_p5 = pneg %p2575_p4  ;;  %s293_s8 = sshll.u32 %s2441_s24, 4  ;;  %s294_s8 = int_to_ptr.vmem [resolvable:$true] %s293_s8 }
  0x23   : > { %3100 = sst [smem:[#allocation29_spill]] %s3099_s23  ;;  %s3067_s15 = smov 128  }
  0x24   : > { %s277_s22 = sshll.u32 %s3098_s4, 4  ;;  %p2583_p6 = pnand %p1872_p5, %p66_p1  ;;  %s278_s22 = int_to_ptr.hbm [resolvable:$true] %s277_s22 }
  0x25   : > { %s3066_s7 = smov 8   ;;  %s40_s20 = sadd.s32 1, %s2430_s16 }
  0x26   : > { %s291_s4 = sshll.u32 %s3102_s5, 4  ;;  %p41_p7 = scmp.ge.s32.totalorder %s40_s20, 2  ;;  %s292_s4 = int_to_ptr.hbm [resolvable:$true] %s291_s4 }
  0x27   : > { %1875 = dma.hbm_to_vmem [thread:$0]  (!%p2583_p6), %s278_s22, 2048, %s280_s25, [#allocation11], %s3067_s15, %s3067_s15, %s3066_s7  }
  0x28   : > { %1878 = dma.hbm_to_vmem [thread:$0]  (!%p2583_p6), %s292_s4, 2048, %s294_s8, [#allocation14], %s3067_s15, %s3067_s15, %s3066_s7  }
  0x29   : > { %s43_s21 = sadd.s32 1, %s2434_s17  ;;  %s52_s24 = sadd.s32 1, %s2418_s13 }
  0x2a   : > { %p59_p8 = scmp.ne.s32.totalorder %s2418_s13, %s2414_s12  ;;  %s3154_s20 = smov (%p41_p7, %s40_s20), 0 }
  0x2b   : > { %3103 = sst [smem:[#allocation30_spill]] %s3154_s20  ;;  %s3156_s21 = smov (!%p41_p7, %s43_s21), %s2434_s17 }
  0x2c   : > { %s2610_s22 = ssub.s32 %s2430_s16, %s3154_s20  ;;  %p60_p9 = scmp.eq.s32.totalorder %s2438_s18, 0 }
  0x2d   : > { %p45_p10 = scmp.ge.s32.totalorder %s3156_s21, 2  ;;  %p65_p11 = scmp.ne.s32.totalorder %s2414_s12, %s2410_s11 }
  0x2e   : > { %p61_p12 = por %p60_p9, %p59_p8  ;;  %p104_p13 = scmp.eq.s32.totalorder %s2610_s22, 0 }
  0x2f   : > { %s3158_s21 = smov (%p45_p10, %s3156_s21), 0  ;;  %p2622_p0 = por %p66_p1, %p65_p11 }
  0x30   : > { %3104 = sst [smem:[#allocation31_spill]] %s3158_s21  ;;  %p3083_p3 = scmp.lt.s32.totalorder %s2438_s18, 4 }
  0x31   : > { %s3105_s4 = scalar_select %p2622_p0, 1, 0 }
  0x32   : > { %s2629_s8 = ssub.s32 %s2434_s17, %s3158_s21  ;;  %s3075_s25 = sand.u32 1, %s2418_s13  }
  0x33   : > { %3106 = sst [smem:[#allocation32_spill]] %s3105_s4  ;;  %s49_s7 = sor.u32 %s2610_s22, %s2629_s8 }
  0x34   : > { %3107 = sst [smem:[#allocation33_spill]] %s2629_s8  ;;  %p130_p5 = scmp.eq.s32.totalorder %s2629_s8, 0 }
  0x35   : > { %p50_p7 = scmp.eq.s32.totalorder %s49_s7, 0  ;;  %s1545_s11 = sshll.u32 %s3075_s25, 6 }
  0x36   : > { %s1671_s15 = sshll.u32 %s2434_s17, 5  ;;  %p2640_p8 = pnand %p3083_p3, %p61_p12 }
  0x37   : > { %s2645_s20 = scalar_select %p50_p7, %s2418_s13, %s52_s24  }
  0x38   : > { %s333_s21 = sadd.s32 %s2430_s16, %s1671_s15  ;;  %s3078_s4 = sand.u32 1, %s2438_s18  }
  0x39   : > { %s1548_s14 = sshll.u32 %s333_s21, 2  ;;  %s3109_s1 = sld [smem:[#allocation35_spill]] }
  0x3a   : > { %s352_s7 = scalar_lea.vmem [#allocation7], %s1545_s11  ;;  %s3110_s6 = sld [smem:[#allocation40_spill]] }
  0x3b   : > { %s362_s2 = sshll.u32 %s352_s7, 4  ;;  %s2657_s24 = scalar_lea.sflag [#allocation8], %s3078_s4  ;;  %s363_s2 = int_to_ptr.vmem [resolvable:$true] %s362_s2 }
  0x3c   : > { %s3079_s15 = smov 64   ;;  %s3081_s12 = smov 4  }
  0x3d   : > { %s3111_s23 = smov 128   ;;  %s3112_s17 = smov 8  }
  0x3e   : > { %s3113_s0 = sld [smem:[#allocation34_spill]]  ;;  %s3116_s26 = smov 64  }
  0x3f   : > { %s359_s3 = scalar_lea.hbm %s3109_s1, %s1548_s14  ;;  %s3115_s1 = smov 4  }
  0x40   : > { %s360_s25 = sshll.u32 %s359_s3, 4  ;;  %s305_s8 = sshll.u32 %s3110_s6, 4  ;;  %s361_s25 = int_to_ptr.hbm [resolvable:$true] %s360_s25  ;;  %s306_s8 = int_to_ptr.hbm [resolvable:$true] %s305_s8 }
  0x41   : > { %1888 = dma.hbm_to_vmem [thread:$0]  (!%p2640_p8), %s361_s25, 1024, %s363_s2, %s2657_s24, %s3111_s23, %s3079_s15, %s3081_s12  }
  0x42   : > { %s2446_s3 = smov [#allocation15]   ;;  %s328_s25 = scalar_lea.vmem [#allocation4], %s1545_s11 }
  0x43   : > { %s307_s27 = sshll.u32 %s2446_s3, 4  ;;  %s338_s4 = sshll.u32 %s328_s25, 4  ;;  %s308_s27 = int_to_ptr.vmem [resolvable:$true] %s307_s27  ;;  %s339_s4 = int_to_ptr.vmem [resolvable:$true] %s338_s4 }
  0x44   : > { %1881 = dma.hbm_to_vmem [thread:$0]  (!%p2583_p6), %s306_s8, 2048, %s308_s27, [#allocation14], %s3111_s23, %s3111_s23, %s3112_s17  }
  0x45   : > { %s335_s2 = scalar_lea.hbm %s3113_s0, %s1548_s14  ;;  %s3114_s12 = sand.u32 1, %s2418_s13  }
  0x46   : > { %s336_s15 = sshll.u32 %s335_s2, 4  ;;  %s325_s3 = scalar_lea.sflag [#allocation5], %s3114_s12  ;;  %s337_s15 = int_to_ptr.hbm [resolvable:$true] %s336_s15 }
  0x47   : > { %1885 = dma.hbm_to_vmem [thread:$0]  (!%p2640_p8), %s337_s15, 1024, %s339_s4, %s325_s3, %s3111_s23, %s3116_s26, %s3115_s1  }
  0x48   : > { %s106_s6 = sadd.s32 1, %s2406_s10  ;;  %p113_p6 = scmp.ne.s32.totalorder %s2406_s10, %s2402_s9 }
  0x49   : > { %s2684_s8 = scalar_select %p104_p13, %s2406_s10, %s106_s6  }
  0x4a   : > { %p119_p10 = scmp.ne.s32.totalorder %s2402_s9, %s2398_s30  ;;  %s374_s14 = sand.u32 1, %s2406_s10  }
  0x4b   : > { %s1673_s5 = sshll.u32 %s2430_s16, 6  ;;  %s3118_s12 = sld [smem:[#allocation24_spill]] }
  0x4c   : > { %p115_p11 = por %p113_p6, %p60_p9  ;;  %p2696_p12 = por %p119_p10, %p66_p1 }
  0x4d   : > { %s1553_s6 = sshll.u32 %s374_s14, 6  ;;  %s3120_s30 = sld [smem:[#allocation36_spill]] }
  0x4e   : > { %s376_s17 = scalar_lea.vmem [#allocation9], %s1553_s6  ;;  %s3121_s7 = sld [smem:[#allocation28_spill]] }
  0x4f   : > { %s384_s21 = sshll.u32 %s376_s17, 4  ;;  %p1889_p13 = pnand %p3083_p3, %p115_p11  ;;  %s385_s21 = int_to_ptr.vmem [resolvable:$true] %s384_s21 }
  0x50   : > { %s1539_s2 = sadd.s32 4294967294, %s2438_s18   ;;  %s132_s25 = sadd.s32 1, %s2394_s29 }
  0x51   : > { %p139_p7 = scmp.ne.s32.totalorder %s2394_s29, %s2390_s28  ;;  %p145_p8 = scmp.ne.s32.totalorder %s2390_s28, %s3118_s12 }
  0x52   : > { %s2716_s3 = scalar_select %p130_p5, %s2394_s29, %s132_s25  }
  0x53   : > { %s381_s23 = scalar_lea.hbm %s3120_s30, %s1673_s5  ;;  %p2722_p6 = por %p253_p2, %p139_p7 }
  0x54   : > { %s382_s27 = sshll.u32 %s381_s23, 4  ;;  %p259_p10 = scmp.eq.s32.totalorder %s1539_s2, 3  ;;  %s383_s27 = int_to_ptr.hbm [resolvable:$true] %s382_s27 }
  0x55   : > { %1891 = dma.hbm_to_vmem [thread:$0]  (!%p1889_p13), %s383_s27, 1024, %s385_s21, %s2657_s24, %s3116_s26, %s3116_s26, %s3115_s1  }
  0x56   : > { %p141_p11 = por %p139_p7, %p60_p9  ;;  %p2730_p3 = por %p145_p8, %p66_p1 }
  0x57   : > { %p2734_p13 = por %p259_p10, %p145_p8  ;;  %s396_s5 = sand.u32 1, %s2394_s29  }
  0x58   : > { %s1556_s12 = sshll.u32 %s396_s5, 6  ;;  %s1674_s6 = sshll.u32 %s3121_s7, 6 }
  0x59   : > { %s3125_s30 = sld [smem:[#allocation37_spill]]  ;;  %s398_s17 = scalar_lea.vmem [#allocation10], %s1556_s12 }
  0x5a   : > { %s406_s21 = sshll.u32 %s398_s17, 4  ;;  %p3126_p2 = scmp.lt.s32.totalorder %s2438_s18, 4  ;;  %s407_s21 = int_to_ptr.vmem [resolvable:$true] %s406_s21 }
  0x5b   : > { %s3127_s2 = sand.u32 1, %s2438_s18   ;;  %s3129_s7 = sld [smem:[#allocation25_spill]] (!%p2575_p4) }
  0x5c   : > { %p1892_p9 = pnand %p3126_p2, %p141_p11  ;;  %s395_s25 = scalar_lea.sflag [#allocation11], %s3127_s2 }
  0x5d   : > { %418 = sbr.rel (%p2575_p4) target bundleno = 677 (0x2a5), region = 52 }
  0x5f   : > { %s403_s23 = scalar_lea.hbm %s3125_s30, %s1674_s6 }
  0x60   : > { %s404_s27 = sshll.u32 %s403_s23, 4  ;;  %s405_s27 = int_to_ptr.hbm [resolvable:$true] %s404_s27 }
  0x61   : > { %1894 = dma.hbm_to_vmem [thread:$0]  (!%p1892_p9), %s405_s27, 1024, %s407_s21, %s395_s25, %s3116_s26, %s3116_s26, %s3115_s1  }
  0x62   : > { %s420_s4 = sand.u32 1, %s3129_s7  }
  0x63   : > { %s1560_s6 = sshll.u32 %s420_s4, 6  ;;  %s421_s15 = scalar_lea.sflag [#allocation5], %s420_s4 }
  0x64   : > { %s2753_s12 = scalar_lea.vmem [#allocation4], %s1560_s6 }
  0x65   : > { %2357 = dma.done.wait (%p2622_p0), %s421_s15, 1024  }
  0x66   : > { %2359 = vsyncadd (%p2622_p0), %s421_s15, 4294966272  ;;  %s430_s30 = sand.u32 1, %s2566_s19   ;;  %s2760_s1 = scalar_lea.vmem [#allocation7], %s1560_s6 }
  0x67   : > { %s431_s23 = scalar_lea.sflag [#allocation8], %s430_s30 }
  0x68   : > { %2361 = dma.done.wait (%p2622_p0), %s431_s23, 1024  }
  0x69   : > { %2363 = vsyncadd (%p2622_p0), %s431_s23, 4294966272  ;;  %s442_s0 = sand.u32 1, %s2402_s9  }
  0x6a   : > { %s1562_s26 = sshll.u32 %s442_s0, 6 }
  0x6b   : > { %s2767_s27 = scalar_lea.vmem [#allocation9], %s1562_s26 }
  0x6c   : > { %2365 = dma.done.wait (%p2696_p12), %s431_s23, 1024  }
  0x6d   : > { %2367 = vsyncadd (%p2696_p12), %s431_s23, 4294966272  ;;  %s452_s17 = sand.u32 1, %s2390_s28   ;;  %s451_s2 = scalar_lea.sflag [#allocation11], %s430_s30 }
  0x6e   : > { %s1563_s21 = sshll.u32 %s452_s17, 6 }
  0x6f   : > { %s2776_s25 = scalar_lea.vmem [#allocation10], %s1563_s21 }
  0x70   : > { %2369 = dma.done.wait (%p2730_p3), %s451_s2, 1024  }
  0x71   : > { %2371 = vsyncadd (%p2730_p3), %s451_s2, 4294966272 }
  0x72   : > { %2373 = dma.done.wait (%p66_p1), [#allocation11], 2048  }
  0x73   : > { %2375 = vsyncadd (%p66_p1), [#allocation11], 4294965248 }
  0x74   : > { %2377 = dma.done.wait (%p66_p1), [#allocation14], 4096  }
  0x75   : > { %2379 = vsyncadd (%p66_p1), [#allocation14], 4294963200  ;;  %s2790_s22 = scalar_lea.vmem [#allocation16], %s1563_s21  ;;  %s3131_s7 = sld [smem:[#allocation26_spill]] }
  0x7b   : > { %p1568_p4 = scmp.ne.s32.totalorder %s3131_s7, 0 }
  0x7d   : > { %526 = sbr.rel (%p1568_p4) target bundleno = 163 (0xa3), region = 84 }
  0x82   : > { %v2447_v0 = vmov 0.0  }
  0x83   : > { %527 = vst [vmem:[#allocation2 + $0x30] sm:$0xff] %v2447_v0 }
  0x84   : > { %528 = vst [vmem:[#allocation2] sm:$0xff] %v2447_v0 }
  0x85   : > { %529 = vst [vmem:[#allocation2 + $0x58] sm:$0xff] %v2447_v0 }
  0x86   : > { %530 = vst [vmem:[#allocation2 + $0x18] sm:$0xff] %v2447_v0 }
  0x87   : > { %531 = vst [vmem:[#allocation2 + $0x50] sm:$0xff] %v2447_v0 }
  0x88   : > { %532 = vst [vmem:[#allocation2 + $0x68] sm:$0xff] %v2447_v0 }
  0x89   : > { %533 = vst [vmem:[#allocation2 + $0x8] sm:$0xff] %v2447_v0 }
  0x8a   : > { %534 = vst [vmem:[#allocation2 + $0x48] sm:$0xff] %v2447_v0 }
  0x8b   : > { %535 = vst [vmem:[#allocation2 + $0x40] sm:$0xff] %v2447_v0 }
  0x8c   : > { %536 = vst [vmem:[#allocation2 + $0x20] sm:$0xff] %v2447_v0 }
  0x8d   : > { %537 = vst [vmem:[#allocation2 + $0x10] sm:$0xff] %v2447_v0 }
  0x8e   : > { %538 = vst [vmem:[#allocation2 + $0x38] sm:$0xff] %v2447_v0 }
  0x8f   : > { %539 = vst [vmem:[#allocation2 + $0x60] sm:$0xff] %v2447_v0 }
  0x90   : > { %540 = vst [vmem:[#allocation2 + $0x70] sm:$0xff] %v2447_v0 }
  0x91   : > { %541 = vst [vmem:[#allocation2 + $0x78] sm:$0xff] %v2447_v0 }
  0x92   : > { %542 = vst [vmem:[#allocation2 + $0x28] sm:$0xff] %v2447_v0 }
  0x93   : > { %543 = vst [vmem:[#allocation3 + $0x28] sm:$0xff] %v2447_v0 }
  0x94   : > { %544 = vst [vmem:[#allocation3 + $0x68] sm:$0xff] %v2447_v0 }
  0x95   : > { %545 = vst [vmem:[#allocation3 + $0x10] sm:$0xff] %v2447_v0 }
  0x96   : > { %546 = vst [vmem:[#allocation3 + $0x40] sm:$0xff] %v2447_v0 }
  0x97   : > { %547 = vst [vmem:[#allocation3 + $0x48] sm:$0xff] %v2447_v0 }
  0x98   : > { %548 = vst [vmem:[#allocation3 + $0x30] sm:$0xff] %v2447_v0 }
  0x99   : > { %549 = vst [vmem:[#allocation3 + $0x70] sm:$0xff] %v2447_v0 }
  0x9a   : > { %550 = vst [vmem:[#allocation3 + $0x38] sm:$0xff] %v2447_v0 }
  0x9b   : > { %551 = vst [vmem:[#allocation3 + $0x20] sm:$0xff] %v2447_v0 }
  0x9c   : > { %552 = vst [vmem:[#allocation3 + $0x78] sm:$0xff] %v2447_v0 }
  0x9d   : > { %553 = vst [vmem:[#allocation3 + $0x18] sm:$0xff] %v2447_v0 }
  0x9e   : > { %554 = vst [vmem:[#allocation3 + $0x58] sm:$0xff] %v2447_v0 }
  0x9f   : > { %555 = vst [vmem:[#allocation3] sm:$0xff] %v2447_v0 }
  0xa0   : > { %556 = vst [vmem:[#allocation3 + $0x8] sm:$0xff] %v2447_v0 }
  0xa1   : > { %557 = vst [vmem:[#allocation3 + $0x60] sm:$0xff] %v2447_v0 }
  0xa2   : > { %558 = vst [vmem:[#allocation3 + $0x50] sm:$0xff] %v2447_v0 }
  0xa3 PF: > { %v1682_v1 = vld [vmem:[%s2767_s27 + $0x38] sm:$0xff]  ;;  %v1681_v2 = vld [vmem:[%s2767_s27 + $0x30] sm:$0xff]  ;;  %v1680_v3 = vld [vmem:[%s2767_s27 + $0x28] sm:$0xff]  ;;  %s3132_s19 = sld [smem:[#allocation26_spill]] }
  0xa4   : > { %703 = vmatpush.bf16.msra.mxu0 %v1682_v1  ;;  %1786 = vmatpush.bf16.msra.mxu2 %v1682_v1  ;;  %v1679_v4 = vld [vmem:[%s2767_s27 + $0x20] sm:$0xff]  ;;  %v1678_v5 = vld [vmem:[%s2767_s27 + $0x18] sm:$0xff]  ;;  %v1677_v6 = vld [vmem:[%s2767_s27 + $0x10] sm:$0xff] }
  0xa5   : > { %864 = vmatpush.bf16.msra.mxu1 %v1682_v1  ;;  %1794 = vmatpush.bf16.msra.mxu3 %v1682_v1  ;;  %v1676_v7 = vld [vmem:[%s2767_s27 + $0x8] sm:$0xff]  ;;  %v1675_v8 = vld [vmem:[%s2767_s27] sm:$0xff]  ;;  %v1685_v17 = vld [vmem:[%s2753_s12 + $0x10] sm:$0xff] }
  0xa6   : > { %v1683_v9 = vld [vmem:[%s2753_s12] sm:$0xff]  ;;  %v1684_v13 = vld [vmem:[%s2753_s12 + $0x8] sm:$0xff]  ;;  %v1689_v18 = vld [vmem:[%s2753_s12 + $0x30] sm:$0xff] }
  0xa7   : > { %v1687_v10 = vld [vmem:[%s2753_s12 + $0x20] sm:$0xff]  ;;  %v1688_v14 = vld [vmem:[%s2753_s12 + $0x28] sm:$0xff]  ;;  %v1693_v19 = vld [vmem:[%s2760_s1 + $0x10] sm:$0xff] }
  0xa8   : > { %704 = vmatpush.bf16.msra.mxu0 %v1681_v2  ;;  %1787 = vmatpush.bf16.msra.mxu2 %v1681_v2  ;;  %v1691_v11 = vld [vmem:[%s2760_s1] sm:$0xff]  ;;  %v1692_v15 = vld [vmem:[%s2760_s1 + $0x8] sm:$0xff]  ;;  %v1697_v20 = vld [vmem:[%s2760_s1 + $0x30] sm:$0xff] }
  0xa9   : > { %865 = vmatpush.bf16.msra.mxu1 %v1681_v2  ;;  %1795 = vmatpush.bf16.msra.mxu3 %v1681_v2  ;;  %v1695_v12 = vld [vmem:[%s2760_s1 + $0x20] sm:$0xff]  ;;  %v1696_v16 = vld [vmem:[%s2760_s1 + $0x28] sm:$0xff]  ;;  %v1686_v21 = vld [vmem:[%s2753_s12 + $0x18] sm:$0xff]  ;;  %p1665_p1 = scmp.ne.s32.totalorder %s3132_s19, 1 }
  0xaa   : > { %v1690_v22 = vld [vmem:[%s2753_s12 + $0x38] sm:$0xff]  ;;  %v575_v25 = vld [vmem:[#allocation2 + $0x30] sm:$0xff]  ;;  %v784_v26 = vld [vmem:[#allocation3 + $0x28] sm:$0xff]  ;;  %s3133_s4 = sld [smem:[#allocation41_spill]] (!%p1665_p1) }
  0xab   : > { %v1694_v23 = vld [vmem:[%s2760_s1 + $0x18] sm:$0xff]  ;;  %v583_v31 = vld [vmem:[#allocation2 + $0x40] sm:$0xff]  ;;  %v785_v37 = vld [vmem:[#allocation3 + $0x68] sm:$0xff] }
  0xac   : > { %705 = vmatpush.bf16.msra.mxu0 %v1680_v3  ;;  %1788 = vmatpush.bf16.msra.mxu2 %v1680_v3  ;;  %v1698_v24 = vld [vmem:[%s2760_s1 + $0x38] sm:$0xff]  ;;  %v792_v32 = vld [vmem:[#allocation3 + $0x20] sm:$0xff]  ;;  %v786_v49 = vld [vmem:[#allocation3 + $0x10] sm:$0xff] }
  0xad   : > { %866 = vmatpush.bf16.msra.mxu1 %v1680_v3  ;;  %1796 = vmatpush.bf16.msra.mxu3 %v1680_v3  ;;  %v576_v34 = vld [vmem:[#allocation2] sm:$0xff]  ;;  %v793_v44 = vld [vmem:[#allocation3 + $0x78] sm:$0xff]  ;;  %v585_v55 = vld [vmem:[#allocation2 + $0x10] sm:$0xff] }
  0xae   : > { %v584_v43 = vld [vmem:[#allocation2 + $0x20] sm:$0xff]  ;;  %v577_v46 = vld [vmem:[#allocation2 + $0x58] sm:$0xff] }
  0xaf   : > { %v794_v56 = vld [vmem:[#allocation3 + $0x18] sm:$0xff]  ;;  %v787_v61 = vld [vmem:[#allocation3 + $0x40] sm:$0xff] }
  0xb0   : > { %706 = vmatpush.bf16.msra.mxu0 %v1679_v4  ;;  %1789 = vmatpush.bf16.msra.mxu2 %v1679_v4  ;;  %v578_v58 = vld [vmem:[#allocation2 + $0x18] sm:$0xff] }
  0xb1   : > { %867 = vmatpush.bf16.msra.mxu1 %v1679_v4  ;;  %1797 = vmatpush.bf16.msra.mxu3 %v1679_v4  ;;  %v586_v3 = vld [vmem:[#allocation2 + $0x38] sm:$0xff] }
  0xb2   : > { %v795_v4 = vld [vmem:[#allocation3 + $0x58] sm:$0xff] }
  0xb4   : > { %707 = vmatpush.bf16.msra.mxu0 %v1678_v5  ;;  %1790 = vmatpush.bf16.msra.mxu2 %v1678_v5 }
  0xb5   : > { %868 = vmatpush.bf16.msra.mxu1 %v1678_v5  ;;  %1798 = vmatpush.bf16.msra.mxu3 %v1678_v5 }
  0xb8   : > { %708 = vmatpush.bf16.msra.mxu0 %v1677_v6  ;;  %1791 = vmatpush.bf16.msra.mxu2 %v1677_v6 }
  0xb9   : > { %869 = vmatpush.bf16.msra.mxu1 %v1677_v6  ;;  %1799 = vmatpush.bf16.msra.mxu3 %v1677_v6  ;;  %v579_v6 = vld [vmem:[#allocation2 + $0x50] sm:$0xff] }
  0xbc   : > { %709 = vmatpush.bf16.msra.mxu0 %v1676_v7  ;;  %1792 = vmatpush.bf16.msra.mxu2 %v1676_v7 }
  0xbd   : > { %870 = vmatpush.bf16.msra.mxu1 %v1676_v7  ;;  %1800 = vmatpush.bf16.msra.mxu3 %v1676_v7 }
  0xc0   : > { %710 = vmatpush.bf16.msra.mxu0 %v1675_v8  ;;  %1793 = vmatpush.bf16.msra.mxu2 %v1675_v8 }
  0xc1   : > { %871 = vmatpush.bf16.msra.mxu1 %v1675_v8  ;;  %1801 = vmatpush.bf16.msra.mxu3 %v1675_v8 }
  0xc3   : > { %711 = vmatmul.bf16.vlgmr.msra.gmra.mxu0 %v1683_v9  ;;  %731 = vmatmul.bf16.vlgmr.msra.gmra.mxu2 %v1687_v10  ;;  %v788_v9 = vld [vmem:[#allocation3 + $0x48] sm:$0xff] }
  0xc4   : > { %872 = vmatmul.bf16.vlgmr.msra.gmra.mxu1 %v1691_v11  ;;  %892 = vmatmul.bf16.vlgmr.msra.gmra.mxu3 %v1695_v12 }
  0xd3   : > { %716 = vmatmul.bf16.gmra.mxu0 %v1684_v13  ;;  %736 = vmatmul.bf16.gmra.mxu2 %v1688_v14 }
  0xd4   : > { %877 = vmatmul.bf16.gmra.mxu1 %v1692_v15  ;;  %897 = vmatmul.bf16.gmra.mxu3 %v1696_v16  ;;  %v587_v15 = vld [vmem:[#allocation2 + $0x60] sm:$0xff] }
  0xd5   : > { %v796_v16 = vld [vmem:[#allocation3] sm:$0xff] }
  0xe3   : > { %721 = vmatmul.bf16.gmra.mxu0 %v1685_v17  ;;  %741 = vmatmul.bf16.gmra.mxu2 %v1689_v18  ;;  %v580_v18 = vld [vmem:[#allocation2 + $0x68] sm:$0xff] }
  0xe4   : > { %882 = vmatmul.bf16.gmra.mxu1 %v1693_v19  ;;  %902 = vmatmul.bf16.gmra.mxu3 %v1697_v20 }
  0xf3   : > { %726 = vmatmul.bf16.gmra.mxu0 %v1686_v21  ;;  %746 = vmatmul.bf16.gmra.mxu2 %v1690_v22  ;;  %v789_v21 = vld [vmem:[#allocation3 + $0x30] sm:$0xff] }
  0xf4   : > { %887 = vmatmul.bf16.gmra.mxu1 %v1694_v23  ;;  %907 = vmatmul.bf16.gmra.mxu3 %v1698_v24 }
 0x140   : > { %v712_v27 = vpop.f32.mrf.mxu0 }
 0x141   : > { %v752_v28 = vadd.f32 %v712_v27, %v575_v25  ;;  %v873_v29 = vpop.f32.mrf.mxu1  ;;  %v588_v27 = vld [vmem:[#allocation2 + $0x70] sm:$0xff] }
 0x142   : > { %v913_v30 = vadd.f32 %v873_v29, %v784_v26 }
 0x143   : > { %768 = vst [vmem:[#allocation2 + $0x30] sm:$0xff] %v752_v28  ;;  %v797_v28 = vld [vmem:[#allocation3 + $0x8] sm:$0xff] }
 0x144   : > { %929 = vst [vmem:[#allocation3 + $0x28] sm:$0xff] %v913_v30  ;;  %v581_v30 = vld [vmem:[#allocation2 + $0x8] sm:$0xff] }
 0x146   : > { %v732_v33 = vpop.f32.mrf.mxu2 }
 0x147   : > { %v760_v35 = vadd.f32 %v732_v33, %v583_v31  ;;  %v893_v36 = vpop.f32.mrf.mxu3  ;;  %v790_v33 = vld [vmem:[#allocation3 + $0x70] sm:$0xff] }
 0x148   : > { %v921_v38 = vadd.f32 %v893_v36, %v792_v32  ;;  %v714_v39 = vpop.f32.mrf.mxu0 }
 0x149   : > { %776 = vst [vmem:[#allocation2 + $0x40] sm:$0xff] %v760_v35  ;;  %v753_v40 = vadd.f32 %v714_v39, %v576_v34  ;;  %v875_v41 = vpop.f32.mrf.mxu1  ;;  %v589_v39 = vld [vmem:[#allocation2 + $0x78] sm:$0xff] }
 0x14a   : > { %937 = vst [vmem:[#allocation3 + $0x20] sm:$0xff] %v921_v38  ;;  %v914_v42 = vadd.f32 %v875_v41, %v785_v37 }
 0x14b   : > { %769 = vst [vmem:[#allocation2] sm:$0xff] %v753_v40  ;;  %v798_v40 = vld [vmem:[#allocation3 + $0x60] sm:$0xff] }
 0x14c   : > { %930 = vst [vmem:[#allocation3 + $0x68] sm:$0xff] %v914_v42  ;;  %v582_v42 = vld [vmem:[#allocation2 + $0x48] sm:$0xff] }
 0x14e   : > { %v734_v45 = vpop.f32.mrf.mxu2 }
 0x14f   : > { %v761_v47 = vadd.f32 %v734_v45, %v584_v43  ;;  %v895_v48 = vpop.f32.mrf.mxu3  ;;  %v791_v45 = vld [vmem:[#allocation3 + $0x38] sm:$0xff] }
 0x150   : > { %v922_v50 = vadd.f32 %v895_v48, %v793_v44  ;;  %v717_v51 = vpop.f32.mrf.mxu0 }
 0x151   : > { %777 = vst [vmem:[#allocation2 + $0x20] sm:$0xff] %v761_v47  ;;  %v754_v52 = vadd.f32 %v717_v51, %v577_v46  ;;  %v878_v53 = vpop.f32.mrf.mxu1  ;;  %v590_v51 = vld [vmem:[#allocation2 + $0x28] sm:$0xff] }
 0x152   : > { %938 = vst [vmem:[#allocation3 + $0x78] sm:$0xff] %v922_v50  ;;  %v915_v54 = vadd.f32 %v878_v53, %v786_v49 }
 0x153   : > { %770 = vst [vmem:[#allocation2 + $0x58] sm:$0xff] %v754_v52  ;;  %v799_v52 = vld [vmem:[#allocation3 + $0x50] sm:$0xff] }
 0x154   : > { %931 = vst [vmem:[#allocation3 + $0x10] sm:$0xff] %v915_v54 }
 0x156   : > { %v737_v57 = vpop.f32.mrf.mxu2 }
 0x157   : > { %v762_v59 = vadd.f32 %v737_v57, %v585_v55  ;;  %v898_v60 = vpop.f32.mrf.mxu3 }
 0x158   : > { %v923_v62 = vadd.f32 %v898_v60, %v794_v56  ;;  %v719_v63 = vpop.f32.mrf.mxu0 }
 0x159   : > { %778 = vst [vmem:[#allocation2 + $0x10] sm:$0xff] %v762_v59  ;;  %v755_v0 = vadd.f32 %v719_v63, %v578_v58  ;;  %v880_v1 = vpop.f32.mrf.mxu1 }
 0x15a   : > { %939 = vst [vmem:[#allocation3 + $0x18] sm:$0xff] %v923_v62  ;;  %v916_v2 = vadd.f32 %v880_v1, %v787_v61 }
 0x15b   : > { %771 = vst [vmem:[#allocation2 + $0x18] sm:$0xff] %v755_v0 }
 0x15c   : > { %932 = vst [vmem:[#allocation3 + $0x40] sm:$0xff] %v916_v2 }
 0x15e   : > { %v739_v5 = vpop.f32.mrf.mxu2 }
 0x15f   : > { %v763_v7 = vadd.f32 %v739_v5, %v586_v3  ;;  %v900_v8 = vpop.f32.mrf.mxu3 }
 0x160   : > { %v924_v10 = vadd.f32 %v900_v8, %v795_v4  ;;  %v722_v11 = vpop.f32.mrf.mxu0 }
 0x161   : > { %779 = vst [vmem:[#allocation2 + $0x38] sm:$0xff] %v763_v7  ;;  %v756_v12 = vadd.f32 %v722_v11, %v579_v6  ;;  %v883_v13 = vpop.f32.mrf.mxu1 }
 0x162   : > { %940 = vst [vmem:[#allocation3 + $0x58] sm:$0xff] %v924_v10  ;;  %v917_v14 = vadd.f32 %v883_v13, %v788_v9 }
 0x163   : > { %772 = vst [vmem:[#allocation2 + $0x50] sm:$0xff] %v756_v12 }
 0x164   : > { %933 = vst [vmem:[#allocation3 + $0x48] sm:$0xff] %v917_v14 }
 0x166   : > { %v742_v17 = vpop.f32.mrf.mxu2 }
 0x167   : > { %v764_v19 = vadd.f32 %v742_v17, %v587_v15  ;;  %v903_v20 = vpop.f32.mrf.mxu3 }
 0x168   : > { %v925_v22 = vadd.f32 %v903_v20, %v796_v16  ;;  %v724_v23 = vpop.f32.mrf.mxu0 }
 0x169   : > { %780 = vst [vmem:[#allocation2 + $0x60] sm:$0xff] %v764_v19  ;;  %v757_v24 = vadd.f32 %v724_v23, %v580_v18  ;;  %v885_v25 = vpop.f32.mrf.mxu1 }
 0x16a   : > { %941 = vst [vmem:[#allocation3] sm:$0xff] %v925_v22  ;;  %v918_v26 = vadd.f32 %v885_v25, %v789_v21 }
 0x16b   : > { %773 = vst [vmem:[#allocation2 + $0x68] sm:$0xff] %v757_v24 }
 0x16c   : > { %934 = vst [vmem:[#allocation3 + $0x30] sm:$0xff] %v918_v26 }
 0x16e   : > { %v744_v29 = vpop.f32.mrf.mxu2 }
 0x16f   : > { %v765_v31 = vadd.f32 %v744_v29, %v588_v27  ;;  %v905_v32 = vpop.f32.mrf.mxu3 }
 0x170   : > { %v926_v34 = vadd.f32 %v905_v32, %v797_v28  ;;  %v727_v35 = vpop.f32.mrf.mxu0 }
 0x171   : > { %781 = vst [vmem:[#allocation2 + $0x70] sm:$0xff] %v765_v31  ;;  %v758_v36 = vadd.f32 %v727_v35, %v581_v30  ;;  %v888_v37 = vpop.f32.mrf.mxu1 }
 0x172   : > { %942 = vst [vmem:[#allocation3 + $0x8] sm:$0xff] %v926_v34  ;;  %v919_v38 = vadd.f32 %v888_v37, %v790_v33 }
 0x173   : > { %774 = vst [vmem:[#allocation2 + $0x8] sm:$0xff] %v758_v36 }
 0x174   : > { %935 = vst [vmem:[#allocation3 + $0x70] sm:$0xff] %v919_v38 }
 0x176   : > { %v747_v41 = vpop.f32.mrf.mxu2 }
 0x177   : > { %v766_v43 = vadd.f32 %v747_v41, %v589_v39  ;;  %v908_v44 = vpop.f32.mrf.mxu3 }
 0x178   : > { %v927_v46 = vadd.f32 %v908_v44, %v798_v40  ;;  %v729_v47 = vpop.f32.mrf.mxu0 }
 0x179   : > { %782 = vst [vmem:[#allocation2 + $0x78] sm:$0xff] %v766_v43  ;;  %v759_v48 = vadd.f32 %v729_v47, %v582_v42  ;;  %v890_v49 = vpop.f32.mrf.mxu1 }
 0x17a   : > { %943 = vst [vmem:[#allocation3 + $0x60] sm:$0xff] %v927_v46  ;;  %v920_v50 = vadd.f32 %v890_v49, %v791_v45 }
 0x17b   : > { %775 = vst [vmem:[#allocation2 + $0x48] sm:$0xff] %v759_v48 }
 0x17c   : > { %936 = vst [vmem:[#allocation3 + $0x38] sm:$0xff] %v920_v50 }
 0x17e   : > { %v749_v53 = vpop.f32.mrf.mxu2  ;;  %948 = sbr.rel (%p1665_p1) target bundleno = 655 (0x28f), region = 88 }
 0x17f   : > { %v767_v54 = vadd.f32 %v749_v53, %v590_v51  ;;  %v910_v55 = vpop.f32.mrf.mxu3 }
 0x180   : > { %v928_v56 = vadd.f32 %v910_v55, %v799_v52 }
 0x181   : > { %783 = vst [vmem:[#allocation2 + $0x28] sm:$0xff] %v767_v54 }
 0x182   : > { %944 = vst [vmem:[#allocation3 + $0x50] sm:$0xff] %v928_v56 }
 0x183   : > { %v1012_v57 = vld [vmem:[#allocation13 + $0x78] sm:$0xff]  ;;  %v1011_v59 = vld [vmem:[#allocation13 + $0x70] sm:$0xff]  ;;  %v1010_v62 = vld [vmem:[#allocation13 + $0x68] sm:$0xff] }
 0x184   : > { %v2818_v58 = vld [vmem:[#allocation15 + $0x78] sm:$0xff]  ;;  %1802 = vmatpush.msra.mxu3 %v1012_v57  ;;  %v2821_v60 = vld [vmem:[#allocation15 + $0x70] sm:$0xff]  ;;  %1013 = vmatpush.msra.mxu0 %v1012_v57  ;;  %v2826_v63 = vld [vmem:[#allocation15 + $0x68] sm:$0xff] }
 0x185   : > { %1191 = vmatpush.msra.mxu2 %v2818_v58  ;;  %v2823_v61 = vld [vmem:[#allocation12 + $0x78] sm:$0xff]  ;;  %v2828_v0 = vld [vmem:[#allocation12 + $0x70] sm:$0xff]  ;;  %v2831_v1 = vld [vmem:[#allocation12 + $0x68] sm:$0xff] }
 0x186   : > { %1078 = vmatpush.msra.mxu1 %v2823_v61  ;;  %1803 = vmatpush.msra.mxu3 %v1011_v59  ;;  %v1009_v2 = vld [vmem:[#allocation13 + $0x60] sm:$0xff]  ;;  %v1008_v5 = vld [vmem:[#allocation13 + $0x58] sm:$0xff]  ;;  %v1007_v8 = vld [vmem:[#allocation13 + $0x50] sm:$0xff] }
 0x187   : > { %1192 = vmatpush.msra.mxu2 %v2821_v60  ;;  %1014 = vmatpush.msra.mxu0 %v1011_v59  ;;  %v2834_v3 = vld [vmem:[#allocation15 + $0x60] sm:$0xff]  ;;  %v2840_v6 = vld [vmem:[#allocation15 + $0x58] sm:$0xff]  ;;  %v2846_v9 = vld [vmem:[#allocation15 + $0x50] sm:$0xff] }
 0x188   : > { %1079 = vmatpush.msra.mxu1 %v2828_v0  ;;  %1804 = vmatpush.msra.mxu3 %v1010_v62  ;;  %v2837_v4 = vld [vmem:[#allocation12 + $0x60] sm:$0xff]  ;;  %v2843_v7 = vld [vmem:[#allocation12 + $0x58] sm:$0xff]  ;;  %v2849_v10 = vld [vmem:[#allocation12 + $0x50] sm:$0xff] }
 0x189   : > { %1193 = vmatpush.msra.mxu2 %v2826_v63  ;;  %1015 = vmatpush.msra.mxu0 %v1010_v62  ;;  %v1006_v11 = vld [vmem:[#allocation13 + $0x48] sm:$0xff]  ;;  %v1005_v14 = vld [vmem:[#allocation13 + $0x40] sm:$0xff]  ;;  %v1004_v17 = vld [vmem:[#allocation13 + $0x38] sm:$0xff] }
 0x18a   : > { %1080 = vmatpush.msra.mxu1 %v2831_v1  ;;  %1805 = vmatpush.msra.mxu3 %v1009_v2  ;;  %v2852_v12 = vld [vmem:[#allocation15 + $0x48] sm:$0xff]  ;;  %v2858_v15 = vld [vmem:[#allocation15 + $0x40] sm:$0xff]  ;;  %v2864_v18 = vld [vmem:[#allocation15 + $0x38] sm:$0xff] }
 0x18b   : > { %1194 = vmatpush.msra.mxu2 %v2834_v3  ;;  %1016 = vmatpush.msra.mxu0 %v1009_v2  ;;  %v2855_v13 = vld [vmem:[#allocation12 + $0x48] sm:$0xff]  ;;  %v2861_v16 = vld [vmem:[#allocation12 + $0x40] sm:$0xff]  ;;  %v2867_v19 = vld [vmem:[#allocation12 + $0x38] sm:$0xff] }
 0x18c   : > { %1081 = vmatpush.msra.mxu1 %v2837_v4  ;;  %1806 = vmatpush.msra.mxu3 %v1008_v5  ;;  %v1003_v20 = vld [vmem:[#allocation13 + $0x30] sm:$0xff]  ;;  %v1002_v23 = vld [vmem:[#allocation13 + $0x28] sm:$0xff]  ;;  %v1001_v26 = vld [vmem:[#allocation13 + $0x20] sm:$0xff] }
 0x18d   : > { %1195 = vmatpush.msra.mxu2 %v2840_v6  ;;  %1017 = vmatpush.msra.mxu0 %v1008_v5  ;;  %v2870_v21 = vld [vmem:[#allocation15 + $0x30] sm:$0xff]  ;;  %v2876_v24 = vld [vmem:[#allocation15 + $0x28] sm:$0xff]  ;;  %v2882_v27 = vld [vmem:[#allocation15 + $0x20] sm:$0xff] }
 0x18e   : > { %1082 = vmatpush.msra.mxu1 %v2843_v7  ;;  %1807 = vmatpush.msra.mxu3 %v1007_v8  ;;  %v2873_v22 = vld [vmem:[#allocation12 + $0x30] sm:$0xff]  ;;  %v2879_v25 = vld [vmem:[#allocation12 + $0x28] sm:$0xff]  ;;  %v2885_v28 = vld [vmem:[#allocation12 + $0x20] sm:$0xff] }
 0x18f   : > { %1196 = vmatpush.msra.mxu2 %v2846_v9  ;;  %1018 = vmatpush.msra.mxu0 %v1007_v8  ;;  %v1000_v29 = vld [vmem:[#allocation13 + $0x18] sm:$0xff]  ;;  %v999_v32 = vld [vmem:[#allocation13 + $0x10] sm:$0xff]  ;;  %v1701_v35 = vld [vmem:[%s2776_s25] sm:$0xff]  }
 0x190   : > { %1083 = vmatpush.msra.mxu1 %v2849_v10  ;;  %1808 = vmatpush.msra.mxu3 %v1006_v11  ;;  %v2888_v30 = vld [vmem:[#allocation15 + $0x18] sm:$0xff]  ;;  %v2894_v33 = vld [vmem:[#allocation15 + $0x10] sm:$0xff]  ;;  %v998_v36 = vld [vmem:[#allocation13 + $0x8] sm:$0xff]  ;;  %v1702_v41 = vunpack.c.l.bf16 %v1701_v35  ;;  %v1703_v46 = vunpack.c.h.bf16 %v1701_v35 }
 0x191   : > { %1197 = vmatpush.msra.mxu2 %v2852_v12  ;;  %1019 = vmatpush.msra.mxu0 %v1006_v11  ;;  %v2891_v31 = vld [vmem:[#allocation12 + $0x18] sm:$0xff]  ;;  %v2897_v34 = vld [vmem:[#allocation12 + $0x10] sm:$0xff]  ;;  %v2901_v37 = vld [vmem:[#allocation15 + $0x8] sm:$0xff] }
 0x192   : > { %1084 = vmatpush.msra.mxu1 %v2855_v13  ;;  %1809 = vmatpush.msra.mxu3 %v1005_v14  ;;  %v966_v38 = vld [vmem:[#allocation12 + $0x8] sm:$0xff]  ;;  %v997_v39 = vld [vmem:[#allocation13] sm:$0xff]  ;;  %v949_v45 = vld [vmem:[#allocation2 + $0x30] sm:$0xff] }
 0x193   : > { %1198 = vmatpush.msra.mxu2 %v2858_v15  ;;  %1020 = vmatpush.msra.mxu0 %v1005_v14  ;;  %v2905_v40 = vld [vmem:[#allocation15] sm:$0xff]  ;;  %v981_v44 = vld [vmem:[#allocation3 + $0x28] sm:$0xff]  ;;  %v983_v53 = vld [vmem:[#allocation3 + $0x10] sm:$0xff] }
 0x194   : > { %1085 = vmatpush.msra.mxu1 %v2861_v16  ;;  %1810 = vmatpush.msra.mxu3 %v1004_v17  ;;  %v993_v42 = vld [vmem:[#allocation3] sm:$0xff]  ;;  %v994_v47 = vld [vmem:[#allocation3 + $0x8] sm:$0xff]  ;;  %v951_v54 = vld [vmem:[#allocation2 + $0x58] sm:$0xff] }
 0x195   : > { %1199 = vmatpush.msra.mxu2 %v2864_v18  ;;  %1021 = vmatpush.msra.mxu0 %v1004_v17  ;;  %v965_v43 = vld [vmem:[#allocation12] sm:$0xff]  ;;  %v982_v48 = vld [vmem:[#allocation3 + $0x68] sm:$0xff]  ;;  %v996_v56 = vld [vmem:[#allocation3 + $0x50] sm:$0xff] }
 0x196   : > { %1086 = vmatpush.msra.mxu1 %v2867_v19  ;;  %1811 = vmatpush.msra.mxu3 %v1003_v20  ;;  %v950_v49 = vld [vmem:[#allocation2] sm:$0xff]  ;;  %v1772_v50 = vld [vmem:[%s2776_s25 + $0x8] sm:$0xff]   ;;  %v952_v59 = vld [vmem:[#allocation2 + $0x18] sm:$0xff] }
 0x197   : > { %1200 = vmatpush.msra.mxu2 %v2870_v21  ;;  %1022 = vmatpush.msra.mxu0 %v1003_v20  ;;  %v1706_v51 = vunpack.c.l.bf16 %v1772_v50  ;;  %v995_v52 = vld [vmem:[#allocation3 + $0x60] sm:$0xff]  ;;  %v1707_v55 = vunpack.c.h.bf16 %v1772_v50  ;;  %v953_v2 = vld [vmem:[#allocation2 + $0x50] sm:$0xff]  ;;  %v954_v8 = vld [vmem:[#allocation2 + $0x68] sm:$0xff] }
 0x198   : > { %1087 = vmatpush.msra.mxu1 %v2873_v22  ;;  %1812 = vmatpush.msra.mxu3 %v1002_v23  ;;  %v984_v57 = vld [vmem:[#allocation3 + $0x40] sm:$0xff]  ;;  %v962_v5 = vld [vmem:[#allocation2 + $0x70] sm:$0xff]  ;;  %v988_v11 = vld [vmem:[#allocation3 + $0x38] sm:$0xff] }
 0x199   : > { %1201 = vmatpush.msra.mxu2 %v2876_v24  ;;  %1023 = vmatpush.msra.mxu0 %v1002_v23  ;;  %v1777_v14 = vld [vmem:[%s2776_s25 + $0x30] sm:$0xff]   ;;  %v989_v17 = vld [vmem:[#allocation3 + $0x20] sm:$0xff]  ;;  %v1776_v23 = vld [vmem:[%s2776_s25 + $0x28] sm:$0xff]  }
 0x19a   : > { %1088 = vmatpush.msra.mxu1 %v2879_v25  ;;  %1813 = vmatpush.msra.mxu3 %v1001_v26  ;;  %v1727_v20 = vunpack.c.h.bf16 %v1777_v14 }
 0x19b   : > { %1202 = vmatpush.msra.mxu2 %v2882_v27  ;;  %1024 = vmatpush.msra.mxu0 %v1001_v26 }
 0x19c   : > { %1089 = vmatpush.msra.mxu1 %v2885_v28  ;;  %1814 = vmatpush.msra.mxu3 %v1000_v29 }
 0x19d   : > { %1203 = vmatpush.msra.mxu2 %v2888_v30  ;;  %1025 = vmatpush.msra.mxu0 %v1000_v29  ;;  %v1723_v29 = vunpack.c.h.bf16 %v1776_v23 }
 0x19e   : > { %1090 = vmatpush.msra.mxu1 %v2891_v31  ;;  %1815 = vmatpush.msra.mxu3 %v999_v32 }
 0x19f   : > { %1204 = vmatpush.msra.mxu2 %v2894_v33  ;;  %1026 = vmatpush.msra.mxu0 %v999_v32  ;;  %v960_v32 = vld [vmem:[#allocation2 + $0x38] sm:$0xff] }
 0x1a0   : > { %1091 = vmatpush.msra.mxu1 %v2897_v34  ;;  %1816 = vmatpush.msra.mxu3 %v998_v36 }
 0x1a1   : > { %1205 = vmatpush.msra.mxu2 %v2901_v37  ;;  %1027 = vmatpush.msra.mxu0 %v998_v36 }
 0x1a2   : > { %1092 = vmatpush.msra.mxu1 %v966_v38  ;;  %1817 = vmatpush.msra.mxu3 %v997_v39 }
 0x1a3   : > { %1206 = vmatpush.msra.mxu2 %v2905_v40  ;;  %1065 = vmatmul.f32.vlgmr.msra.gmra.mxu3 %v993_v42 }
 0x1a4   : > { %1207 = vmatmul.f32.vlgmr.msra.gmra.mxu2 %v1702_v41  ;;  %1818 = vmatpush.msrb.mxu3 %v2823_v61  ;;  %v1773_v61 = vld [vmem:[%s2776_s25 + $0x10] sm:$0xff]  }
 0x1a5   : > { %1028 = vmatpush.msra.mxu0 %v997_v39  ;;  %1093 = vmatpush.msra.mxu1 %v965_v43  ;;  %v1710_v62 = vunpack.c.l.bf16 %v1773_v61  ;;  %v2951_v39 = vld [vmem:[%s3133_s4] ss:$0 sm:$0xff] }
 0x1a6   : > { %1029 = vmatmul.f32.vlgmr.msra.gmra.mxu0 %v981_v44  ;;  %1819 = vmatpush.msrb.mxu3 %v2828_v0  ;;  %v961_v0 = vld [vmem:[#allocation2 + $0x60] sm:$0xff] }
 0x1a7   : > { %1094 = vmatmul.f32.vlgmr.msra.gmra.mxu1 %v949_v45 }
 0x1a8   : > { %1820 = vmatpush.msrb.mxu3 %v2831_v1  ;;  %v985_v1 = vld [vmem:[#allocation3 + $0x48] sm:$0xff] }
 0x1aa   : > { %1821 = vmatpush.msrb.mxu3 %v2837_v4  ;;  %v1711_v4 = vunpack.c.h.bf16 %v1773_v61 }
 0x1ab   : > { %1068 = vmatmul.f32.gmra.mxu3 %v994_v47 }
 0x1ac   : > { %1210 = vmatmul.f32.gmra.mxu2 %v1703_v46  ;;  %1822 = vmatpush.msrb.mxu3 %v2843_v7  ;;  %v986_v7 = vld [vmem:[#allocation3 + $0x30] sm:$0xff] }
 0x1ae   : > { %1032 = vmatmul.f32.gmra.mxu0 %v982_v48  ;;  %1823 = vmatpush.msrb.mxu3 %v2849_v10  ;;  %v1774_v10 = vld [vmem:[%s2776_s25 + $0x18] sm:$0xff]  }
 0x1af   : > { %1097 = vmatmul.f32.gmra.mxu1 %v950_v49 }
 0x1b0   : > { %1824 = vmatpush.msrb.mxu3 %v2855_v13  ;;  %v1775_v13 = vld [vmem:[%s2776_s25 + $0x20] sm:$0xff]  }
 0x1b2   : > { %1825 = vmatpush.msrb.mxu3 %v2861_v16  ;;  %v1726_v16 = vunpack.c.l.bf16 %v1777_v14 }
 0x1b3   : > { %1071 = vmatmul.f32.gmra.mxu3 %v995_v52 }
 0x1b4   : > { %1213 = vmatmul.f32.gmra.mxu2 %v1706_v51  ;;  %1826 = vmatpush.msrb.mxu3 %v2867_v19  ;;  %v1719_v19 = vunpack.c.h.bf16 %v1775_v13 }
 0x1b6   : > { %1035 = vmatmul.f32.gmra.mxu0 %v983_v53  ;;  %1827 = vmatpush.msrb.mxu3 %v2873_v22  ;;  %v958_v22 = vld [vmem:[#allocation2 + $0x20] sm:$0xff] }
 0x1b7   : > { %1100 = vmatmul.f32.gmra.mxu1 %v951_v54 }
 0x1b8   : > { %1828 = vmatpush.msrb.mxu3 %v2879_v25  ;;  %v1722_v25 = vunpack.c.l.bf16 %v1776_v23 }
 0x1ba   : > { %1829 = vmatpush.msrb.mxu3 %v2885_v28  ;;  %v959_v28 = vld [vmem:[#allocation2 + $0x10] sm:$0xff] }
 0x1bb   : > { %1074 = vmatmul.f32.gmra.mxu3 %v996_v56 }
 0x1bc   : > { %1216 = vmatmul.f32.gmra.mxu2 %v1707_v55  ;;  %1830 = vmatpush.msrb.mxu3 %v2891_v31  ;;  %v992_v31 = vld [vmem:[#allocation3 + $0x58] sm:$0xff] }
 0x1be   : > { %1038 = vmatmul.f32.gmra.mxu0 %v984_v57  ;;  %1831 = vmatpush.msrb.mxu3 %v2897_v34 }
 0x1bf   : > { %1103 = vmatmul.f32.gmra.mxu1 %v952_v59 }
 0x1c0   : > { %1832 = vmatpush.msrb.mxu3 %v966_v38 }
 0x1c2   : > { %1833 = vmatpush.msrb.mxu3 %v965_v43 }
 0x1c3   : > { %1130 = vmatmul.f32.vlgmr.msrb.gmra.mxu3 %v961_v0 }
 0x1c4   : > { %1219 = vmatmul.f32.gmra.mxu2 %v1710_v62  ;;  %1834 = vmatpush.msra.mxu3 %v2818_v58  ;;  %v1714_v58 = vunpack.c.l.bf16 %v1774_v10 }
 0x1c6   : > { %1041 = vmatmul.f32.gmra.mxu0 %v985_v1  ;;  %1835 = vmatpush.msra.mxu3 %v2821_v60  ;;  %v963_v60 = vld [vmem:[#allocation2 + $0x78] sm:$0xff] }
 0x1c7   : > { %1106 = vmatmul.f32.gmra.mxu1 %v953_v2 }
 0x1c8   : > { %1836 = vmatpush.msra.mxu3 %v2826_v63  ;;  %v987_v63 = vld [vmem:[#allocation3 + $0x70] sm:$0xff] }
 0x1ca   : > { %1837 = vmatpush.msra.mxu3 %v2834_v3  ;;  %v955_v3 = vld [vmem:[#allocation2 + $0x8] sm:$0xff] }
 0x1cb   : > { %1133 = vmatmul.f32.gmra.mxu3 %v962_v5 }
 0x1cc   : > { %1222 = vmatmul.f32.gmra.mxu2 %v1711_v4  ;;  %1838 = vmatpush.msra.mxu3 %v2840_v6  ;;  %v1715_v6 = vunpack.c.h.bf16 %v1774_v10 }
 0x1ce   : > { %1044 = vmatmul.f32.gmra.mxu0 %v986_v7  ;;  %1839 = vmatpush.msra.mxu3 %v2846_v9  ;;  %v964_v9 = vld [vmem:[#allocation2 + $0x28] sm:$0xff] }
 0x1cf   : > { %1109 = vmatmul.f32.gmra.mxu1 %v954_v8 }
 0x1d0   : > { %1840 = vmatpush.msra.mxu3 %v2852_v12  ;;  %v956_v12 = vld [vmem:[#allocation2 + $0x48] sm:$0xff] }
 0x1d2   : > { %1841 = vmatpush.msra.mxu3 %v2858_v15  ;;  %v1718_v15 = vunpack.c.l.bf16 %v1775_v13 }
 0x1d3   : > { %1136 = vmatmul.f32.gmra.mxu3 %v963_v60 }
 0x1d4   : > { %1225 = vmatmul.f32.gmra.mxu2 %v1714_v58  ;;  %1842 = vmatpush.msra.mxu3 %v2864_v18  ;;  %v957_v18 = vld [vmem:[#allocation2 + $0x40] sm:$0xff] }
 0x1d6   : > { %1047 = vmatmul.f32.gmra.mxu0 %v987_v63  ;;  %1843 = vmatpush.msra.mxu3 %v2870_v21  ;;  %v990_v21 = vld [vmem:[#allocation3 + $0x78] sm:$0xff] }
 0x1d7   : > { %1112 = vmatmul.f32.gmra.mxu1 %v955_v3 }
 0x1d8   : > { %1844 = vmatpush.msra.mxu3 %v2876_v24  ;;  %v1778_v24 = vld [vmem:[%s2776_s25 + $0x38] sm:$0xff]  }
 0x1d9   : > { %v1730_v26 = vunpack.c.l.bf16 %v1778_v24 }
 0x1da   : > { %1845 = vmatpush.msra.mxu3 %v2882_v27  ;;  %v991_v27 = vld [vmem:[#allocation3 + $0x18] sm:$0xff] }
 0x1db   : > { %1139 = vmatmul.f32.gmra.mxu3 %v964_v9 }
 0x1dc   : > { %1228 = vmatmul.f32.gmra.mxu2 %v1715_v6  ;;  %1846 = vmatpush.msra.mxu3 %v2888_v30  ;;  %v1731_v30 = vunpack.c.h.bf16 %v1778_v24 }
 0x1de   : > { %1050 = vmatmul.f32.gmra.mxu0 %v988_v11  ;;  %1847 = vmatpush.msra.mxu3 %v2894_v33 }
 0x1df   : > { %1115 = vmatmul.f32.gmra.mxu1 %v956_v12 }
 0x1e0   : > { %1848 = vmatpush.msra.mxu3 %v2901_v37 }
 0x1e2   : > { %1849 = vmatpush.msra.mxu3 %v2905_v40 }
 0x1e3   : > { %1243 = vmatmul.f32.vlgmr.msra.gmra.mxu3 %v1726_v16 }
 0x1e4   : > { %1231 = vmatmul.f32.gmra.mxu2 %v1718_v15 }
 0x1e6   : > { %1053 = vmatmul.f32.gmra.mxu0 %v989_v17 }
 0x1e7   : > { %1118 = vmatmul.f32.gmra.mxu1 %v957_v18 }
 0x1eb   : > { %1246 = vmatmul.f32.gmra.mxu3 %v1727_v20 }
 0x1ec   : > { %1234 = vmatmul.f32.gmra.mxu2 %v1719_v19 }
 0x1ee   : > { %1056 = vmatmul.f32.gmra.mxu0 %v990_v21 }
 0x1ef   : > { %1121 = vmatmul.f32.gmra.mxu1 %v958_v22 }
 0x1f3   : > { %1249 = vmatmul.f32.gmra.mxu3 %v1730_v26 }
 0x1f4   : > { %1237 = vmatmul.f32.gmra.mxu2 %v1722_v25 }
 0x1f6   : > { %1059 = vmatmul.f32.gmra.mxu0 %v991_v27 }
 0x1f7   : > { %1124 = vmatmul.f32.gmra.mxu1 %v959_v28 }
 0x1fb   : > { %1252 = vmatmul.f32.gmra.mxu3 %v1731_v30 }
 0x1fc   : > { %1240 = vmatmul.f32.gmra.mxu2 %v1723_v29 }
 0x1fe   : > { %1062 = vmatmul.f32.gmra.mxu0 %v992_v31 }
 0x1ff   : > { %1127 = vmatmul.f32.gmra.mxu1 %v960_v32 }
 0x223   : > { %v1030_v33 = vpop.f32.mrf.mxu0 }
 0x224   : > { %v1095_v34 = vpop.f32.mrf.mxu1 }
 0x225   : > { %v1096_v35 = vadd.f32 %v1095_v34, %v1030_v33 }
 0x226   : > { %v2946_v36 = vpop.f32.mrf.mxu3 }
 0x227   : > { %v1208_v37 = vpop.f32.mrf.mxu2 }
 0x228   : > { %v1256_v38 = vadd.f32 %v1208_v37, %v1096_v35 }
 0x22a   : > { %v1276_v43 = vadd.f32 %v2951_v39, %v1256_v38 }
 0x22b   : > { %v1033_v40 = vpop.f32.mrf.mxu0 }
 0x22c   : > { %v1098_v41 = vpop.f32.mrf.mxu1  ;;  %2030 = vtanh.f32 %v1276_v43 }
 0x22d   : > { %v1099_v42 = vadd.f32 %v1098_v41, %v1033_v40 }
 0x22e   : > { %v2954_v44 = vpop.f32.mrf.mxu3 }
 0x22f   : > { %v1211_v45 = vpop.f32.mrf.mxu2 }
 0x230   : > { %v1257_v46 = vadd.f32 %v1211_v45, %v1099_v42 }
 0x232   : > { %v1277_v47 = vadd.f32 %v2951_v39, %v1257_v46  ;;  %v2031_v53 = vpop.eup %2030 }
 0x233   : > { %v1036_v48 = vpop.f32.mrf.mxu0 }
 0x234   : > { %2032 = vtanh.f32 %v1277_v47  ;;  %v1101_v49 = vpop.f32.mrf.mxu1 }
 0x235   : > { %v1102_v50 = vadd.f32 %v1101_v49, %v1036_v48 }
 0x236   : > { %v2957_v51 = vpop.f32.mrf.mxu3 }
 0x237   : > { %v1214_v52 = vpop.f32.mrf.mxu2 }
 0x238   : > { %v1258_v56 = vadd.f32 %v1214_v52, %v1102_v50 }
 0x23a   : > { %v2033_v54 = vpop.eup %2032  ;;  %v1278_v62 = vadd.f32 %v2951_v39, %v1258_v56 }
 0x23b   : > { %v1735_v55 = vpack.c.bf16 %v2033_v54, %v2031_v53  ;;  %v1039_v57 = vpop.f32.mrf.mxu0 }
 0x23c   : > { %v1104_v59 = vpop.f32.mrf.mxu1  ;;  %2034 = vtanh.f32 %v1278_v62 }
 0x23d   : > { %1736 = vst [vmem:[%s2790_s22] sm:$0xff] %v1735_v55   ;;  %v1105_v61 = vadd.f32 %v1104_v59, %v1039_v57 }
 0x23e   : > { %v2961_v0 = vpop.f32.mrf.mxu3 }
 0x23f   : > { %v1217_v1 = vpop.f32.mrf.mxu2 }
 0x240   : > { %v1259_v2 = vadd.f32 %v1217_v1, %v1105_v61 }
 0x242   : > { %v1279_v4 = vadd.f32 %v2951_v39, %v1259_v2  ;;  %v2035_v60 = vpop.eup %2034 }
 0x243   : > { %v1042_v5 = vpop.f32.mrf.mxu0 }
 0x244   : > { %2036 = vtanh.f32 %v1279_v4  ;;  %v1107_v7 = vpop.f32.mrf.mxu1 }
 0x245   : > { %v1108_v8 = vadd.f32 %v1107_v7, %v1042_v5 }
 0x246   : > { %v1131_v10 = vpop.f32.mrf.mxu3 }
 0x247   : > { %v1220_v58 = vpop.f32.mrf.mxu2  ;;  %v1132_v43 = vadd.f32 %v1131_v10, %v2946_v36 }
 0x248   : > { %v1260_v6 = vadd.f32 %v1220_v58, %v1108_v8 }
 0x24a   : > { %v2037_v63 = vpop.eup %2036  ;;  %v1280_v13 = vadd.f32 %v2951_v39, %v1260_v6 }
 0x24b   : > { %v1740_v3 = vpack.c.bf16 %v2037_v63, %v2035_v60  ;;  %v1045_v9 = vpop.f32.mrf.mxu0 }
 0x24c   : > { %v1110_v11 = vpop.f32.mrf.mxu1  ;;  %2038 = vtanh.f32 %v1280_v13 }
 0x24d   : > { %1779 = vst [vmem:[%s2790_s22 + $0x8] sm:$0xff] %v1740_v3   ;;  %v1111_v12 = vadd.f32 %v1110_v11, %v1045_v9 }
 0x24e   : > { %v1134_v14 = vpop.f32.mrf.mxu3 }
 0x24f   : > { %v1223_v15 = vpop.f32.mrf.mxu2  ;;  %v1135_v53 = vadd.f32 %v1134_v14, %v2954_v44 }
 0x250   : > { %v1261_v16 = vadd.f32 %v1223_v15, %v1111_v12 }
 0x252   : > { %v1281_v17 = vadd.f32 %v2951_v39, %v1261_v16  ;;  %v2039_v23 = vpop.eup %2038 }
 0x253   : > { %v1048_v18 = vpop.f32.mrf.mxu0 }
 0x254   : > { %2040 = vtanh.f32 %v1281_v17  ;;  %v1113_v19 = vpop.f32.mrf.mxu1 }
 0x255   : > { %v1114_v20 = vadd.f32 %v1113_v19, %v1048_v18 }
 0x256   : > { %v1137_v21 = vpop.f32.mrf.mxu3 }
 0x257   : > { %v1226_v22 = vpop.f32.mrf.mxu2  ;;  %v1138_v10 = vadd.f32 %v1137_v21, %v2957_v51 }
 0x258   : > { %v1262_v26 = vadd.f32 %v1226_v22, %v1114_v20 }
 0x25a   : > { %v2041_v24 = vpop.eup %2040  ;;  %v1282_v30 = vadd.f32 %v2951_v39, %v1262_v26 }
 0x25b   : > { %v1745_v25 = vpack.c.bf16 %v2041_v24, %v2039_v23  ;;  %v1051_v27 = vpop.f32.mrf.mxu0 }
 0x25c   : > { %v1116_v28 = vpop.f32.mrf.mxu1  ;;  %2042 = vtanh.f32 %v1282_v30 }
 0x25d   : > { %1780 = vst [vmem:[%s2790_s22 + $0x10] sm:$0xff] %v1745_v25   ;;  %v1117_v29 = vadd.f32 %v1116_v28, %v1051_v27 }
 0x25e   : > { %v1140_v31 = vpop.f32.mrf.mxu3 }
 0x25f   : > { %v1229_v32 = vpop.f32.mrf.mxu2  ;;  %v1141_v14 = vadd.f32 %v1140_v31, %v2961_v0 }
 0x260   : > { %v1263_v33 = vadd.f32 %v1229_v32, %v1117_v29 }
 0x262   : > { %v1283_v34 = vadd.f32 %v2951_v39, %v1263_v33  ;;  %v2043_v42 = vpop.eup %2042 }
 0x263   : > { %v1054_v35 = vpop.f32.mrf.mxu0 }
 0x264   : > { %2044 = vtanh.f32 %v1283_v34  ;;  %v1119_v37 = vpop.f32.mrf.mxu1 }
 0x265   : > { %v1120_v38 = vadd.f32 %v1119_v37, %v1054_v35 }
 0x266   : > { %v1244_v41 = vpop.f32.mrf.mxu3 }
 0x267   : > { %v1232_v40 = vpop.f32.mrf.mxu2  ;;  %v1268_v48 = vadd.f32 %v1244_v41, %v1132_v43 }
 0x268   : > { %v1264_v46 = vadd.f32 %v1232_v40, %v1120_v38 }
 0x269   : > { %v1288_v55 = vadd.f32 %v2951_v39, %v1268_v48 }
 0x26a   : > { %v2045_v45 = vpop.eup %2044  ;;  %v1284_v54 = vadd.f32 %v2951_v39, %v1264_v46 }
 0x26b   : > { %v1750_v47 = vpack.c.bf16 %v2045_v45, %v2043_v42  ;;  %v1057_v49 = vpop.f32.mrf.mxu0 }
 0x26c   : > { %v1122_v50 = vpop.f32.mrf.mxu1  ;;  %2046 = vtanh.f32 %v1284_v54 }
 0x26d   : > { %1781 = vst [vmem:[%s2790_s22 + $0x18] sm:$0xff] %v1750_v47   ;;  %v1123_v52 = vadd.f32 %v1122_v50, %v1057_v49  ;;  %2048 = vtanh.f32 %v1288_v55 }
 0x26e   : > { %v1247_v57 = vpop.f32.mrf.mxu3 }
 0x26f   : > { %v1235_v56 = vpop.f32.mrf.mxu2  ;;  %v1269_v61 = vadd.f32 %v1247_v57, %v1135_v53 }
 0x270   : > { %v1265_v59 = vadd.f32 %v1235_v56, %v1123_v52 }
 0x271   : > { %v1289_v62 = vadd.f32 %v2951_v39, %v1269_v61 }
 0x272   : > { %v1285_v36 = vadd.f32 %v2951_v39, %v1265_v59  ;;  %v2047_v7 = vpop.eup %2046 }
 0x273   : > { %v1060_v1 = vpop.f32.mrf.mxu0  ;;  %v2049_v8 = vpop.eup %2048 }
 0x274   : > { %2050 = vtanh.f32 %v1285_v36  ;;  %v1125_v2 = vpop.f32.mrf.mxu1 }
 0x275   : > { %2052 = vtanh.f32 %v1289_v62  ;;  %v1126_v44 = vadd.f32 %v1125_v2, %v1060_v1 }
 0x276   : > { %v1250_v5 = vpop.f32.mrf.mxu3 }
 0x277   : > { %v1238_v4 = vpop.f32.mrf.mxu2  ;;  %v1270_v6 = vadd.f32 %v1250_v5, %v1138_v10 }
 0x278   : > { %v1266_v60 = vadd.f32 %v1238_v4, %v1126_v44 }
 0x279   : > { %v1290_v16 = vadd.f32 %v2951_v39, %v1270_v6 }
 0x27a   : > { %v2051_v58 = vpop.eup %2050  ;;  %v1286_v15 = vadd.f32 %v2951_v39, %v1266_v60 }
 0x27b   : > { %v2053_v63 = vpop.eup %2052  ;;  %v1755_v3 = vpack.c.bf16 %v2051_v58, %v2047_v7  ;;  %v1063_v9 = vpop.f32.mrf.mxu0 }
 0x27c   : > { %v1765_v11 = vpack.c.bf16 %v2053_v63, %v2049_v8  ;;  %v1128_v12 = vpop.f32.mrf.mxu1  ;;  %2054 = vtanh.f32 %v1286_v15 }
 0x27d   : > { %1782 = vst [vmem:[%s2790_s22 + $0x20] sm:$0xff] %v1755_v3   ;;  %v1129_v13 = vadd.f32 %v1128_v12, %v1063_v9  ;;  %2056 = vtanh.f32 %v1290_v16 }
 0x27e   : > { %1784 = vst [vmem:[%s2790_s22 + $0x30] sm:$0xff] %v1765_v11   ;;  %v1253_v51 = vpop.f32.mrf.mxu3 }
 0x27f   : > { %v1241_v17 = vpop.f32.mrf.mxu2  ;;  %v1271_v19 = vadd.f32 %v1253_v51, %v1141_v14 }
 0x280   : > { %v1267_v18 = vadd.f32 %v1241_v17, %v1129_v13 }
 0x281   : > { %v1291_v21 = vadd.f32 %v2951_v39, %v1271_v19 }
 0x282   : > { %v1287_v20 = vadd.f32 %v2951_v39, %v1267_v18  ;;  %v2055_v0 = vpop.eup %2054 }
 0x283   : > { %v2057_v22 = vpop.eup %2056 }
 0x284   : > { %2058 = vtanh.f32 %v1287_v20 }
 0x285   : > { %2060 = vtanh.f32 %v1291_v21 }
 0x28a   : > { %v2059_v23 = vpop.eup %2058 }
 0x28b   : > { %v2061_v24 = vpop.eup %2060  ;;  %v1760_v25 = vpack.c.bf16 %v2059_v23, %v2055_v0 }
 0x28c   : > { %v1770_v26 = vpack.c.bf16 %v2061_v24, %v2057_v22 }
 0x28d   : > { %1783 = vst [vmem:[%s2790_s22 + $0x28] sm:$0xff] %v1760_v25  }
 0x28e   : > { %1785 = vst [vmem:[%s2790_s22 + $0x38] sm:$0xff] %v1770_v26  }
 0x28f PF: > { %s3134_s6 = sld [smem:[#allocation27_spill]]  ;;  %s1353_s0 = sshll.u32 %s2790_s22, 4  ;;  %s1354_s0 = int_to_ptr.vmem [resolvable:$true] %s1353_s0 }
 0x290   : > { %s3135_s23 = sld [smem:[#allocation42_spill]]  ;;  %s1341_s27 = scalar_lea.sflag [#allocation6], %s452_s17 }
 0x295   : > { %s1699_s15 = sshll.u32 %s3134_s6, 6 }
 0x296   : > { %s1352_s1 = scalar_lea.hbm %s3135_s23, %s1699_s15  ;;  %s2292_s19 = scalar_lea.hbm %s3135_s23, 128 }
 0x297   : > { %s1355_s26 = sshll.u32 %s1352_s1, 4  ;;  %s1356_s26 = int_to_ptr.hbm [resolvable:$true] %s1355_s26 }
 0x298   : > { %s2286_s21 = sshra.s32 %s1356_s26, 4  ;;  %s2287_s21 = int_to_ptr.hbm [resolvable:$true] %s2286_s21 }
 0x299   : > { %s2288_s2 = scalar_lea.hbm %s2287_s21, 64  ;;  %p2293_p12 = scmp.lt.s32.totalorder %s2287_s21, %s3135_s23 }
 0x29a   : > { %p2289_p0 = scmp.ne.s32.totalorder %s2287_s21, %s2288_s2  ;;  %p2294_p7 = scmp.lt.s32.totalorder %s2292_s19, %s2288_s2 }
 0x29c   : > { %p2290_p3 = pnand %p2289_p0, %p2722_p6  ;;  %p2295_p8 = por %p2294_p7, %p2293_p12 }
 0x29e   : > { %p2291_p5 = pneg %p2290_p3 }
 0x2a0   : > { %p2296_p10 = pnand %p2295_p8, %p2291_p5 }
 0x2a2   : > { %2299 = shalt.err (!%p2296_p10)
}
 0x2a3   : > { %s2448_s17 = smov 64   ;;  %s2449_s22 = smov 4  }
 0x2a4   : > { %1870 = dma.vmem_to_hbm [thread:$0]  (%p2722_p6), %s1354_s0, 1024, %s1356_s26, %s1341_s27, %s2448_s17, %s2448_s17, %s2449_s22  }
 0x2a5 PF: > { %s3136_s4 = sld [smem:[#allocation24_spill]]  ;;  %p1906_p11 = scmp.ge.s32.totalorder %s2438_s18, 2 }
 0x2a7   : > { %p1896_p2 = pnand %p1906_p11, %p2734_p13 }
 0x2a9   : > { %p1897_p9 = pneg %p1896_p2 }
 0x2ab   : > { %s1370_s6 = sand.u32 1, %s3136_s4  }
 0x2ac   : > { %s1371_s15 = scalar_lea.sflag [#allocation6], %s1370_s6 }
 0x2ad   : > { %2381 = dma.done.wait (%p1897_p9), %s1371_s15, 1024  }
 0x2ae   : > { %2383 = vsyncadd (%p1897_p9), %s1371_s15, 4294966272  ;;  %s31_s18 = sadd.s32 1, %s2438_s18   ;;  %s3138_s11 = sld [smem:[#allocation25_spill]] }
 0x2af   : > { %p3009_p4 = scmp.ge.s32.totalorder %s31_s18, 6   ;;  %s3139_s15 = sld [smem:[#allocation28_spill]] }
 0x2b0   : > { %s3140_s1 = sld [smem:[#allocation30_spill]]  ;;  %s3143_s27 = smov %s2390_s28 }
 0x2b1   : > { %s3141_s17 = sld [smem:[#allocation31_spill]]  ;;  %s3144_s28 = smov %s2394_s29 }
 0x2b2   : > { %s3145_s29 = smov %s2716_s3  ;;  %s3146_s30 = smov %s2402_s9 }
 0x2b3   : > { %s3147_s9 = smov %s2406_s10  ;;  %s3148_s10 = smov %s2684_s8 }
 0x2b4   : > { %s3149_s12 = smov %s2418_s13  ;;  %s3150_s13 = smov %s2645_s20 }
 0x2b5   : > { %s3151_s14 = smov %s2430_s16  ;;  %30 = sbr.rel (!%p3009_p4) target bundleno = 25 (0x19), region = 154 }
 0x2b6   : > { %s3152_s16 = smov %s3140_s1 }
 0x2ba   :  { %1377 = vsyncpa [#allocation5], 1 }
 0x2bb   :  { %1379 = vsyncpa [#allocation5 + $0x1], 1 }
 0x2bc   :  { %1380 = vsyncpa [#allocation8], 1 }
 0x2bd   :  { %1382 = vsyncpa [#allocation8 + $0x1], 1 }
 0x2be   :  { %1383 = vsyncpa [#allocation11], 1 }
 0x2bf   :  { %1385 = vsyncpa [#allocation11 + $0x1], 1 }
 0x2c0   :  { %1386 = vsyncpa [#allocation14], 1 }
 0x2c1   :  { %1387 = vsyncpa [#allocation6], 1 }
 0x2c2   :  { %1389 = vsyncpa [#allocation6 + $0x1], 1 }

</bundles_post_ra>
